<compile_context>
chip_gen: v7x
topology: tpu7x:2x2x1
jax: 0.10.0
libtpu: 0.0.40
codegen_flags: <defaults>
</compile_context>

<pallas_src>
import functools

import jax
import jax.numpy as jnp
from jax.experimental import pallas as pl
from jax.experimental.pallas import tpu as pltpu


def _rnd_up(a, m):
    return ((a + m - 1) // m) * m


def _quantizer_kernel(x_ref, wt_ref, w2h_ref, q_ref, idx_ref, sse_ref, *,
                      k_chunk, num_k_chunks, n_valid_rows):
    # x_ref  : (D, TM)        transposed (lane-dense) input tile
    # wt_ref : (D, Kp)        transposed padded codebook, resident every tile
    # w2h_ref: (1, Kp)  f32   hoisted 0.5*||W||^2 (padded cols = 1e30)
    # q_ref  : (D, TM)        transposed quantized output (lane-dense store)
    # idx_ref: (1, TM)  i32   nearest-code indices (lane-dense)
    # sse_ref: (1, 128) f32   per-tile partial SSE (scalar broadcast over lanes)
    xT = x_ref[...]
    d, tm = xT.shape

    if num_k_chunks == 1:
        wT = wt_ref[...]                                   # (D, Kp)
        w2h = w2h_ref[...]                                 # (1, Kp) f32
        kp = wT.shape[1]
        # argmin_k of 0.5*||W_k||^2 - x.W_k  (||x||^2 dropped: argmin-invariant)
        xw = jax.lax.dot_general(xT, wT, (((0,), (0,)), ((), ())),
                                 preferred_element_type=jnp.float32)  # (TM, Kp)
        dist = w2h - xw
        min_d = jnp.min(dist, axis=1, keepdims=True)       # (TM, 1)
        col = jax.lax.broadcasted_iota(jnp.int32, (tm, kp), 1)
        masked = jnp.where(dist <= min_d, col, kp)         # first occurrence
        idx = jnp.min(masked, axis=1)                      # (TM,) i32
        # Gather codebook cols via one-hot matmul (MXU-friendly gather).
        onehot = (idx[:, None] == col).astype(wT.dtype)    # (TM, Kp)
        qT = jax.lax.dot_general(wT, onehot, (((1,), (1,)), ((), ())),
                                 preferred_element_type=jnp.float32)  # (D, TM)
    else:
        # Large codebook: stream Kp in chunks with running (min, idx, q) so the
        # (TM, Kp) intermediates never materialize at full width.
        def body(c, carry):
            best_d, best_i, q_acc = carry
            off = pl.multiple_of(c * k_chunk, 128)
            wc = wt_ref[:, pl.ds(off, k_chunk)]            # (D, kc)
            w2c = w2h_ref[:, pl.ds(off, k_chunk)]          # (1, kc)
            xw = jax.lax.dot_general(xT, wc, (((0,), (0,)), ((), ())),
                                     preferred_element_type=jnp.float32)
            dist = w2c - xw                                # (TM, kc)
            loc_min = jnp.min(dist, axis=1, keepdims=True)
            col = jax.lax.broadcasted_iota(jnp.int32, (tm, k_chunk), 1)
            masked = jnp.where(dist <= loc_min, col, k_chunk)
            loc = jnp.min(masked, axis=1, keepdims=True)   # (TM, 1) local idx
            onehot = (loc == col).astype(wc.dtype)         # (TM, kc)
            q_loc = jax.lax.dot_general(wc, onehot, (((1,), (1,)), ((), ())),
                                        preferred_element_type=jnp.float32)
            better = loc_min < best_d                      # strict: earlier chunk wins ties
            best_d = jnp.where(better, loc_min, best_d)
            best_i = jnp.where(better, loc + off, best_i)
            q_acc = jnp.where(better[:, 0][None, :], q_loc, q_acc)
            return best_d, best_i, q_acc

        init = (jnp.full((tm, 1), jnp.inf, jnp.float32),
                jnp.zeros((tm, 1), jnp.int32),
                jnp.zeros((d, tm), jnp.float32))
        _, best_i, qT = jax.lax.fori_loop(0, num_k_chunks, body, init)
        idx = best_i[:, 0]

    q_ref[...] = qT.astype(q_ref.dtype)
    idx_ref[...] = idx[None, :]

    # Per-tile partial SSE for the commitment / latent loss (reduced outside).
    diff = qT - xT.astype(jnp.float32)
    sq = diff * diff
    if n_valid_rows % tm != 0:
        # Row-padded last tile: mask padded rows out of the loss.
        row = pl.program_id(0) * tm + jax.lax.broadcasted_iota(jnp.int32, (1, tm), 1)
        sq = jnp.where(row < n_valid_rows, sq, 0.0)
    sse = jnp.sum(sq)
    sse_ref[...] = jnp.broadcast_to(sse.reshape(1, 1), (1, 128))


@functools.partial(jax.jit, static_argnames=("commitment_cost", "block_rows"))
def quantizer_forward(x, weight, commitment_cost=0.25, block_rows=512):
    """x: (b, c, h, w) with c == embed_dim; weight: (n_embed, embed_dim)."""
    b, c, h, w = x.shape
    n_embed, embed_dim = weight.shape
    assert c == embed_dim
    n_rows = b * h * w
    k_pad = _rnd_up(n_embed, 128)

    # ---- per-generation VMEM budget (v5e/v6e: 128 MiB, v7x: 64 MiB) --------
    try:
        vmem_cap = int(pltpu.get_tpu_info().vmem_capacity_bytes)
    except Exception:   # API/backend unavailable -> assume the smallest part
        vmem_cap = 64 * 1024 * 1024
    if vmem_cap >= 128 * 1024 * 1024:
        vmem_limit, vmem_budget = 100 * 1024 * 1024, 88 * 1024 * 1024
    else:
        vmem_limit, vmem_budget = 56 * 1024 * 1024, 38 * 1024 * 1024

    # ---- padding-aware VMEM estimate (lane pad -> 128, sublane pad -> 8/16) -
    x_isz = jnp.dtype(x.dtype).itemsize
    w_isz = jnp.dtype(weight.dtype).itemsize
    sub = lambda isz: {4: 8, 2: 16, 1: 32}.get(isz, 8)
    d_x = _rnd_up(embed_dim, sub(x_isz))
    d_w = _rnd_up(embed_dim, sub(w_isz))

    def vmem_estimate(tm, kc):
        xq = 2 * 2 * d_x * tm * x_isz           # xT + qT tiles, double-buffered
        idx = 2 * 8 * tm * 4                    # (1, tm) i32 -> 8 sublanes
        sse = 2 * 8 * 128 * 4
        cbook = 2 * d_w * k_pad * w_isz         # resident transposed codebook
        norms = 2 * 8 * k_pad * 4               # (1, k_pad) f32
        interm = 5 * tm * kc * 4                # xw/dist/col/masked/onehot slabs
        interm += 3 * d_x * tm * 4              # qT / diff / sq in f32
        return xq + idx + sse + cbook + norms + interm

    # ---- tile-size / codebook-chunk selection -------------------------------
    block_rows = max(128, (min(int(block_rows), _rnd_up(n_rows, 128)) // 128) * 128)
    k_chunk = k_pad
    while vmem_estimate(block_rows, k_chunk) > vmem_budget:
        if k_chunk > 1024:
            k_chunk = max(1024, _rnd_up(k_chunk // 2, 128))
        elif block_rows > 128:
            block_rows = max(128, ((block_rows // 2) // 128) * 128)
        elif k_chunk > 128:
            k_chunk = max(128, _rnd_up(k_chunk // 2, 128))
        else:
            break
    # Feed both TensorCores on v7x: guarantee >= 2 row tiles when possible.
    if _rnd_up(n_rows, block_rows) // block_rows < 2 and block_rows > 128:
        block_rows = max(128, ((block_rows // 2) // 128) * 128)

    n_rows_pad = _rnd_up(n_rows, block_rows)
    n_tiles = n_rows_pad // block_rows
    num_k_chunks = -(-k_pad // k_chunk)
    k_pad = num_k_chunks * k_chunk

    # ---- operands: transposed, padded, hoisted half-norms --------------------
    # NCHW -> (C, N) lane-dense slab; column n orders (b, h, w) row-major,
    # matching x.permute(0, 2, 3, 1).view(-1, D) transposed.
    xT = jnp.transpose(x, (1, 0, 2, 3)).reshape(embed_dim, n_rows)
    if n_rows_pad != n_rows:
        xT = jnp.pad(xT, ((0, 0), (0, n_rows_pad - n_rows)))
    wT = jnp.pad(jnp.transpose(weight), ((0, 0), (0, k_pad - n_embed)))
    w2h = 0.5 * jnp.sum(jnp.square(weight.astype(jnp.float32)), axis=1)
    w2h = jnp.pad(w2h, (0, k_pad - n_embed), constant_values=1e30)[None, :]

    kernel = functools.partial(_quantizer_kernel, k_chunk=k_chunk,
                               num_k_chunks=num_k_chunks, n_valid_rows=n_rows)

    qT_pad, idx_row, sse_row = pl.pallas_call(
        kernel,
        out_shape=(
            jax.ShapeDtypeStruct((embed_dim, n_rows_pad), x.dtype),
            jax.ShapeDtypeStruct((1, n_rows_pad), jnp.int32),
            jax.ShapeDtypeStruct((1, n_tiles * 128), jnp.float32),
        ),
        grid_spec=pltpu.PrefetchScalarGridSpec(
            num_scalar_prefetch=0,
            grid=(n_tiles,),
            in_specs=[
                pl.BlockSpec((embed_dim, block_rows), lambda i: (0, i)),  # xT tile
                pl.BlockSpec((embed_dim, k_pad), lambda i: (0, 0)),       # codebook^T
                pl.BlockSpec((1, k_pad), lambda i: (0, 0)),               # 0.5*||W||^2
            ],
            out_specs=[
                pl.BlockSpec((embed_dim, block_rows), lambda i: (0, i)),  # quantized^T
                pl.BlockSpec((1, block_rows), lambda i: (0, i)),          # idx
                pl.BlockSpec((1, 128), lambda i: (0, i)),                 # SSE partial
            ],
        ),
        compiler_params=pltpu.CompilerParams(
            dimension_semantics=("parallel",),   # independent tiles -> 2 TCs on v7x
            vmem_limit_bytes=vmem_limit,
        ),
    )(xT, wT, w2h)

    # (C, N) -> (b, c, h, w); drop padded rows.
    quantized = jnp.transpose(
        qT_pad[:, :n_rows].reshape(embed_dim, b, h, w), (1, 0, 2, 3))
    embed_idx = idx_row[0, :n_rows].reshape(b, h, w)
    sse_total = jnp.sum(sse_row.reshape(n_tiles, 128)[:, 0])
    latent_loss = commitment_cost * sse_total / jnp.float32(b * c * h * w)
    # Straight-through estimator only changes gradients; forward value of
    # quantized_st is exactly `quantized`.
    quantized_st = quantized
    return quantized_st, embed_idx, latent_loss


if __name__ == "__main__":
    n_embed, embed_dim = 64, 4
    b, c, h, w = 2, embed_dim, 16, 16

    key = jax.random.PRNGKey(0)
    kx, kw = jax.random.split(key)
    x = jax.random.normal(kx, (b, c, h, w), dtype=jnp.float32)
    # nn.Embedding default init ~ N(0, 1); deterministic synthetic weights here.
    weight = jax.random.normal(kw, (n_embed, embed_dim), dtype=jnp.float32)

    quantized_st, embed_idx, latent_loss = quantizer_forward(x, weight)
    jax.block_until_ready((quantized_st, embed_idx, latent_loss))

    # Lightweight pure-JAX reference check (full PyTorch distance formula).
    flat = jnp.transpose(x, (0, 2, 3, 1)).reshape(-1, embed_dim)
    dist = (jnp.sum(flat ** 2, 1, keepdims=True) - 2 * flat @ weight.T
            + jnp.sum(weight ** 2, 1)[None, :])
    ref_idx = jnp.argmin(dist, axis=1)
    ref_q = jnp.transpose(weight[ref_idx].reshape(b, h, w, c), (0, 3, 1, 2))
    ref_loss = 0.25 * jnp.mean((ref_q - x) ** 2)
    assert jnp.array_equal(embed_idx.reshape(-1), ref_idx.astype(jnp.int32))
    assert jnp.allclose(quantized_st, ref_q, atol=1e-5)
    assert jnp.allclose(latent_loss, ref_loss, atol=1e-5)

    print("KERNEL_OK")
</pallas_src>

<mosaic_0001>
module attributes {stable_mosaic.version = 11 : i64} {
  func.func @_quantizer_kernel(%arg0: i32, %arg1: memref<4x256xf32, #tpu.memory_space<vmem>>, %arg2: memref<4x128xf32, #tpu.memory_space<vmem>>, %arg3: memref<1x128xf32, #tpu.memory_space<vmem>>, %arg4: memref<4x256xf32, #tpu.memory_space<vmem>>, %arg5: memref<1x256xi32, #tpu.memory_space<vmem>>, %arg6: memref<1x128xf32, #tpu.memory_space<vmem>>) attributes {dimension_semantics = [#tpu.dimension_semantics<parallel>], iteration_bounds = array<i64: 2>, scalar_prefetch = 0 : i64, scratch_operands = 0 : i64, tpu.core_type = #tpu.core_type<tc>, window_params = [{transform_indices = @transform_0, window_bounds = array<i64: 4, 256>}, {pipeline_mode = #tpu.pipeline_mode<synchronous>, transform_indices = @transform_1, window_bounds = array<i64: 4, 128>}, {pipeline_mode = #tpu.pipeline_mode<synchronous>, transform_indices = @transform_2, window_bounds = array<i64: 1, 128>}, {transform_indices = @transform_3, window_bounds = array<i64: 4, 256>}, {transform_indices = @transform_4, window_bounds = array<i64: 1, 256>}, {transform_indices = @transform_5, window_bounds = array<i64: 1, 128>}]} {
    %c0 = arith.constant 0 : index
    %c0_0 = arith.constant 0 : index
    %0 = vector.load %arg1[%c0, %c0_0] : memref<4x256xf32, #tpu.memory_space<vmem>>, vector<4x256xf32>
    %c0_1 = arith.constant 0 : index
    %c0_2 = arith.constant 0 : index
    %1 = vector.load %arg2[%c0_1, %c0_2] : memref<4x128xf32, #tpu.memory_space<vmem>>, vector<4x128xf32>
    %c0_3 = arith.constant 0 : index
    %c0_4 = arith.constant 0 : index
    %2 = vector.load %arg3[%c0_3, %c0_4] : memref<1x128xf32, #tpu.memory_space<vmem>>, vector<1x128xf32>
    %cst = arith.constant dense<0.000000e+00> : vector<256x128xf32>
    %3 = tpu.matmul %0, %1, %cst {dimension_numbers = #tpu.dot_dimension_numbers<[0], [0], [1], [1], [0, 1, 1, 1], [], []>} : vector<4x256xf32>, vector<4x128xf32>, vector<256x128xf32> -> vector<256x128xf32>
    %4 = vector.broadcast %2 : vector<1x128xf32> to vector<256x128xf32>
    %5 = arith.subf %4, %3 : vector<256x128xf32>
    %cst_5 = arith.constant dense<0x7F800000> : vector<256xf32>
    %6 = vector.multi_reduction <minimumf>, %5, %cst_5 [1] : vector<256x128xf32> to vector<256xf32>
    %7 = vector.shape_cast %6 : vector<256xf32> to vector<256x1xf32>
    %8 = tpu.iota {dimensions = array<i32: 1>} : vector<256x128xi32>
    %9 = vector.broadcast %7 : vector<256x1xf32> to vector<256x128xf32>
    %10 = arith.cmpf ole, %5, %9 : vector<256x128xf32>
    %c128_i32 = arith.constant 128 : i32
    %11 = vector.broadcast %c128_i32 : i32 to vector<256x128xi32>
    %12 = arith.select %10, %8, %11 : vector<256x128xi1>, vector<256x128xi32>
    %cst_6 = arith.constant dense<2147483647> : vector<256xi32>
    %13 = vector.multi_reduction <minsi>, %12, %cst_6 [1] : vector<256x128xi32> to vector<256xi32>
    %14 = vector.shape_cast %13 : vector<256xi32> to vector<256x1xi32>
    %15 = vector.broadcast %14 : vector<256x1xi32> to vector<256x128xi32>
    %16 = arith.cmpi eq, %15, %8 : vector<256x128xi32>
    %17 = arith.extui %16 : vector<256x128xi1> to vector<256x128xi32>
    %18 = arith.sitofp %17 : vector<256x128xi32> to vector<256x128xf32>
    %cst_7 = arith.constant dense<0.000000e+00> : vector<4x256xf32>
    %19 = tpu.matmul %1, %18, %cst_7 {dimension_numbers = #tpu.dot_dimension_numbers<[1], [1], [0], [0], [0, 0, 1, 0], [], []>} : vector<4x128xf32>, vector<256x128xf32>, vector<4x256xf32> -> vector<4x256xf32>
    %c0_8 = arith.constant 0 : index
    %c0_9 = arith.constant 0 : index
    %20 = vector.load %arg4[%c0_8, %c0_9] : memref<4x256xf32, #tpu.memory_space<vmem>>, vector<4x256xf32>
    tpu.vector_store %arg4[%c0_8, %c0_9], %19 {strides = array<i32>} : memref<4x256xf32, #tpu.memory_space<vmem>>, vector<4x256xf32>,
    %21 = vector.shape_cast %13 : vector<256xi32> to vector<1x256xi32>
    %c0_10 = arith.constant 0 : index
    %c0_11 = arith.constant 0 : index
    %22 = vector.load %arg5[%c0_10, %c0_11] : memref<1x256xi32, #tpu.memory_space<vmem>>, vector<1x256xi32>
    tpu.vector_store %arg5[%c0_10, %c0_11], %21 {strides = array<i32>} : memref<1x256xi32, #tpu.memory_space<vmem>>, vector<1x256xi32>,
    %23 = arith.subf %19, %0 : vector<4x256xf32>
    %24 = arith.mulf %23, %23 : vector<4x256xf32>
    %25 = vector.shape_cast %24 : vector<4x256xf32> to vector<1x4x256xf32>
    %cst_12 = arith.constant dense<0.000000e+00> : vector<1xf32>
    %26 = vector.multi_reduction <add>, %25, %cst_12 [1, 2] : vector<1x4x256xf32> to vector<1xf32>
    %27 = vector.shape_cast %26 : vector<1xf32> to vector<1x1x1xf32>
    %28 = vector.extract %27[0, 0, 0] : f32 from vector<1x1x1xf32>
    %29 = vector.broadcast %28 : f32 to vector<1x1xf32>
    %30 = vector.shape_cast %29 : vector<1x1xf32> to vector<1x1xf32>
    %31 = vector.broadcast %30 : vector<1x1xf32> to vector<1x128xf32>
    %c0_13 = arith.constant 0 : index
    %c0_14 = arith.constant 0 : index
    %32 = vector.load %arg6[%c0_13, %c0_14] : memref<1x128xf32, #tpu.memory_space<vmem>>, vector<1x128xf32>
    tpu.vector_store %arg6[%c0_13, %c0_14], %31 {strides = array<i32>} : memref<1x128xf32, #tpu.memory_space<vmem>>, vector<1x128xf32>,
    return
  }
  func.func @transform_0(%arg0: i32) -> (i32, i32) {
    %c0_i32 = arith.constant 0 : i32
    %c0_i32_0 = arith.constant 0 : i32
    return %c0_i32, %arg0 : i32, i32
  }
  func.func @transform_1(%arg0: i32) -> (i32, i32) {
    %c0_i32 = arith.constant 0 : i32
    %c0_i32_0 = arith.constant 0 : i32
    %c0_i32_1 = arith.constant 0 : i32
    return %c0_i32, %c0_i32_0 : i32, i32
  }
  func.func @transform_2(%arg0: i32) -> (i32, i32) {
    %c0_i32 = arith.constant 0 : i32
    %c0_i32_0 = arith.constant 0 : i32
    %c0_i32_1 = arith.constant 0 : i32
    return %c0_i32, %c0_i32_0 : i32, i32
  }
  func.func @transform_3(%arg0: i32) -> (i32, i32) {
    %c0_i32 = arith.constant 0 : i32
    %c0_i32_0 = arith.constant 0 : i32
    return %c0_i32, %arg0 : i32, i32
  }
  func.func @transform_4(%arg0: i32) -> (i32, i32) {
    %c0_i32 = arith.constant 0 : i32
    %c0_i32_0 = arith.constant 0 : i32
    return %c0_i32, %arg0 : i32, i32
  }
  func.func @transform_5(%arg0: i32) -> (i32, i32) {
    %c0_i32 = arith.constant 0 : i32
    %c0_i32_0 = arith.constant 0 : i32
    return %c0_i32, %arg0 : i32, i32
  }
}

</mosaic_0001>

<bundles_post_ra>
// kernel: squeeze.2
= control target key start
LH: loop header
LB: loop body
LE: loop exit
PB: predicated region body
PF: predicated region fallthrough
CT: control target
= control target key end

     0   :  { %s135_s0 = inlined_call_operand.vmem [shape: s32[512], index: 0, kind: input, shape index: {}]   ;;  %s136_s1 = inlined_call_operand.hbm [shape: s32[2,16,16], index: 1, kind: output, shape index: {}]  }
   0x1   :  { %v5_v0 = vld [vmem:[%s135_s0] sm:$0xf] }
   0x2   :  { %6 = vst [vmem:[#allocation2] sm:$0xf] %v5_v0 }
   0x3   :  { %2 = vsyncpa [#allocation1], 0  ;;  %s94_s0 = smov 112   ;;  %s95_s8 = smov 80   ;;  %vm8_vm0 = vcmask 130048  }
   0x4   :  { %s96_s9 = smov 96   ;;  %s97_s10 = smov 64  }
   0x5   :  { %s98_s11 = smov 48   ;;  %s99_s12 = smov 32  }
   0x6   :  { %s100_s13 = smov 16   ;;  %s101_s14 = smov [#allocation0]  }
   0x7   :  { %s56_s15 = sshll.u32 %s101_s14, 4  ;;  %s57_s15 = int_to_ptr.vmem [resolvable:$true] %s56_s15 }
   0x8   :  { %s70_s16 = scalar_lea.vmem %s57_s15, 512  ;;  %p75_p1 = scmp.lt.s32.totalorder %s57_s15, %s57_s15 }
   0x9   :  { %v10_v1 = vld [vmem:[#allocation2] sm:$0xf]   ;;  %p71_p0 = scmp.ne.s32.totalorder %s57_s15, %s70_s16  ;;  %p76_p2 = scmp.lt.s32.totalorder %s70_s16, %s70_s16 }
   0xa   :  { %v22_v2 = vld [vmem:[#allocation2] sm:$0xf]   ;;  %11 = vrot.lane.b32.xlu0 %v10_v1, %s94_s0 }
   0xb   :  { %23 = vrot.lane.b32.xlu1 %v22_v2, %s95_s8  ;;  %v16_v3 = vld [vmem:[#allocation2] sm:$0xf]   ;;  %p77_p3 = por %p76_p2, %p75_p1 }
   0xc   :  { %v28_v4 = vld [vmem:[#allocation2] sm:$0xf]  }
   0xd   :  { %v7_v5 = vld [vmem:[#allocation2] sm:$0xf]   ;;  %p78_p4 = pnand %p77_p3, %p71_p0 }
   0xe   :  { %9 = vst.msk [vmem:[#allocation0] ss:$8 sm:$0xf] %vm8_vm0, %v7_v5   ;;  %17 = vrot.lane.b32.xlu0 %v16_v3, %s96_s9  ;;  %v34_v6 = vld [vmem:[#allocation2] sm:$0xf]  }
   0xf   :  { %29 = vrot.lane.b32.xlu1 %v28_v4, %s97_s10  ;;  %v40_v7 = vld [vmem:[#allocation2] sm:$0xf]  }
  0x10   :  { %v46_v8 = vld [vmem:[#allocation2] sm:$0xf]  }
  0x12   :  { %35 = vrot.lane.b32.xlu0 %v34_v6, %s98_s11 }
  0x13   :  { %41 = vrot.lane.b32.xlu1 %v40_v7, %s99_s12 }
  0x16   :  { %47 = vrot.lane.b32.xlu0 %v46_v8, %s100_s13 }
  0x7c   :  { %v12_v9 = vpop.permute.xlu0 %11  }
  0x7d   :  { %v24_v10 = vpop.permute.xlu1 %23   ;;  %15 = vst.msk [vmem:[#allocation0 + $0x1] ss:$8 sm:$0xf] %vm8_vm0, %v12_v9  }
  0x7e   :  { %27 = vst.msk [vmem:[#allocation0 + $0x3] ss:$8 sm:$0xf] %vm8_vm0, %v24_v10  }
  0x80   :  { %v18_v11 = vpop.permute.xlu0 %17  }
  0x81   :  { %v30_v12 = vpop.permute.xlu1 %29   ;;  %21 = vst.msk [vmem:[#allocation0 + $0x2] ss:$8 sm:$0xf] %vm8_vm0, %v18_v11  }
  0x82   :  { %33 = vst.msk [vmem:[#allocation0 + $0x4] ss:$8 sm:$0xf] %vm8_vm0, %v30_v12  }
  0x84   :  { %v36_v13 = vpop.permute.xlu0 %35  }
  0x85   :  { %v42_v14 = vpop.permute.xlu1 %41   ;;  %39 = vst.msk [vmem:[#allocation0 + $0x5] ss:$8 sm:$0xf] %vm8_vm0, %v36_v13  }
  0x86   :  { %45 = vst.msk [vmem:[#allocation0 + $0x6] ss:$8 sm:$0xf] %vm8_vm0, %v42_v14  }
  0x88   :  { %v48_v15 = vpop.permute.xlu0 %47  }
  0x89   :  { %51 = vst.msk [vmem:[#allocation0 + $0x7] ss:$8 sm:$0xf] %vm8_vm0, %v48_v15  }
  0x8a   :  { %81 = shalt.err (!%p78_p4)
}
  0x8b   :  { %s82_s19 = scalar_lea.hbm %s136_s1, 512 }
  0x8c   :  { %p83_p5 = scmp.ne.s32.totalorder %s136_s1, %s82_s19  ;;  %p86_p6 = scmp.lt.u32.totalorder %s82_s19, %s136_s1 }
  0x8e   :  { %p88_p7 = pnand %p86_p6, %p83_p5 }
  0x90   :  { %91 = shalt.err (!%p88_p7)
}
  0x91   :  { %59 = dma.vmem_to_hbm [thread:$0]  %s57_s15, 512, %s136_s1, [#allocation1]  }
  0x92   :  { %92 = dma.done.wait [#allocation1], 512  }
  0x93   :  { %93 = vsyncadd [#allocation1], 4294966784 }
  0x94   :  { %61 = vsyncpa [#allocation1], 1 }

// kernel: quantizer_forward.1
= control target key start
LH: loop header
LB: loop body
LE: loop exit
PB: predicated region body
PF: predicated region fallthrough
CT: control target
= control target key end

     0   :  { %s4774_s18 = smov 0   ;;  %s6550_s0 = inlined_call_operand.vmem [shape: f32[4,512], index: 0, kind: input, shape index: {}]   ;;  %s6551_s1 = inlined_call_operand.vmem [shape: f32[4,128], index: 1, kind: input, shape index: {}]   ;;  %s6552_s2 = inlined_call_operand.vmem [shape: f32[1,128], index: 2, kind: input, shape index: {}]   ;;  %s6553_s3 = inlined_call_operand.vmem [shape: f32[4,512], index: 3, kind: output, shape index: {0}]   ;;  %s6554_s4 = inlined_call_operand.vmem [shape: s32[1,512], index: 4, kind: output, shape index: {1}]   ;;  %s6555_s5 = inlined_call_operand.vmem [shape: f32[1,256], index: 5, kind: output, shape index: {2}]  }
   0x1 LB: > { %s4780_s19 = sadd.s32 4294967295, %s4739_s18   ;;  %p4459_p0 = scmp.ge.s32.totalorder %s4739_s18, 1  ;;  %s4739_s18 = sphi %s4774_s18, %s16_s18  }
   0x2   : > { %p193_p1 = scmp.lt.s32.totalorder %s4739_s18, 3 }
   0x4   : > { %p194_p2 = pnand %p4459_p0, %p193_p1 }
   0x6   : > { %197 = sbr.rel (%p194_p2) target bundleno = 1405 (0x57d), region = 32 }
   0xd   : > { %s4460_s20 = sshll.u32 %s4780_s19, 1  ;;  %v249_v1 = vld [vmem:[%s6551_s1] sm:$0xf]  ;;  %vm415_vm0 = vcmask 1043456   ;;  %vm318_vm1 = vcmask 31744   ;;  %p245_p4 = scmp.lt.s32.totalorder %s4780_s19, 1 }
   0xe   : > { %p229_p3 = scmp.lt.s32.totalorder %s4460_s20, 3  ;;  %4632 = vmatprep.subr.msk.mxu0 %vm415_vm0, %v249_v1  ;;  %4630 = vmatprep.mubr.f32.mxu1 %v249_v1  ;;  %v4839_v35 = vld [vmem:[%s6552_s2] ss:$0 sm:$0xff] }
   0xf   : > { %4633 = vmatpush3.msk.msra.mxu0 %vm415_vm0, %v249_v1  ;;  %s6633_s19 = smov (!%p245_p4, %s4780_s19), 1 }
  0x10   : > { %s6631_s20 = smov (!%p229_p3, %s4460_s20), 3  ;;  %s247_s14 = scalar_lea.vmem %s6555_s5, %s6633_s19 }
  0x11   : > { %s4461_s21 = sshll.u32 %s6631_s20, 2  ;;  %s243_s11 = scalar_lea.vmem %s6554_s4, %s6631_s20 }
  0x12   : > { %s4793_s24 = scalar_lea.vmem %s6550_s0, %s4461_s21  ;;  %s238_s8 = scalar_lea.vmem %s6553_s3, %s4461_s21 }
  0x13   : > { %v248_v0 = vld [vmem:[%s4793_s24] sm:$0xff] }
  0x14   : > { %254 = vxpose.xlu0.b32.start.end [1/1] (short) %v248_v0, 128  ;;  %v4801_v2 = vcombine.high %v248_v0, %v248_v0 }
  0x16   : > { %6583 = vst [vmem:[#allocation2_spill] sm:$0xff] %v4801_v2 }
  0x51   : > { %286 = vxpose.xlu0.b32.start.end [1/1] (short) %v4801_v2, 128 }
  0x94   : > { %v270_v3 = vpop.trf.xlu0 }
  0x95   : > { %4634 = vmatprep.mubr.msk.f32.mxu0 %vm318_vm1, %v270_v3 }
  0x98   : > { %v271_v4 = vpop.trf.xlu0 }
  0x99   : > { %4635 = vmatmul.mubr.msk.f32.vlgmr.msra.gmra.mrb[0].mxu0 %vm318_vm1, %v271_v4 }
  0x9c   : > { %v272_v5 = vpop.trf.xlu0 }
  0x9d   : > { %4637 = vmatprep.mubr.msk.f32.mxu0 %vm318_vm1, %v272_v5 }
  0xa0   : > { %v273_v6 = vpop.trf.xlu0 }
  0xa1   : > { %4638 = vmatmul.mubr.msk.f32.gmra.mrb[2].mxu0 %vm318_vm1, %v273_v6 }
  0xa4   : > { %v274_v7 = vpop.trf.xlu0 }
  0xa5   : > { %4640 = vmatprep.mubr.msk.f32.mxu0 %vm318_vm1, %v274_v7 }
  0xa8   : > { %v275_v8 = vpop.trf.xlu0 }
  0xa9   : > { %4641 = vmatmul.mubr.msk.f32.gmra.mrb[4].mxu0 %vm318_vm1, %v275_v8 }
  0xac   : > { %v276_v9 = vpop.trf.xlu0 }
  0xad   : > { %4643 = vmatprep.mubr.msk.f32.mxu0 %vm318_vm1, %v276_v9 }
  0xb0   : > { %v277_v10 = vpop.trf.xlu0 }
  0xb1   : > { %4644 = vmatmul.mubr.msk.f32.gmra.mrb[6].mxu0 %vm318_vm1, %v277_v10 }
  0xb4   : > { %v278_v11 = vpop.trf.xlu0 }
  0xb5   : > { %4646 = vmatprep.mubr.msk.f32.mxu0 %vm318_vm1, %v278_v11 }
  0xb8   : > { %v279_v12 = vpop.trf.xlu0 }
  0xb9   : > { %4647 = vmatmul.mubr.msk.f32.gmra.mrb[8].mxu0 %vm318_vm1, %v279_v12 }
  0xbc   : > { %v280_v13 = vpop.trf.xlu0 }
  0xbd   : > { %4649 = vmatprep.mubr.msk.f32.mxu0 %vm318_vm1, %v280_v13 }
  0xc0   : > { %v281_v14 = vpop.trf.xlu0 }
  0xc1   : > { %4650 = vmatmul.mubr.msk.f32.gmra.mrb[10].mxu0 %vm318_vm1, %v281_v14 }
  0xc4   : > { %v282_v15 = vpop.trf.xlu0 }
  0xc5   : > { %4652 = vmatprep.mubr.msk.f32.mxu0 %vm318_vm1, %v282_v15 }
  0xc8   : > { %v283_v16 = vpop.trf.xlu0 }
  0xc9   : > { %4653 = vmatmul.mubr.msk.f32.gmra.mrb[12].mxu0 %vm318_vm1, %v283_v16 }
  0xcc   : > { %v284_v17 = vpop.trf.xlu0 }
  0xcd   : > { %4655 = vmatprep.mubr.msk.f32.mxu0 %vm318_vm1, %v284_v17 }
  0xd0   : > { %v285_v18 = vpop.trf.xlu0 }
  0xd1   : > { %4656 = vmatmul.mubr.msk.f32.gmra.mrb[14].mxu0 %vm318_vm1, %v285_v18 }
  0xd4   : > { %v302_v19 = vpop.trf.xlu0 }
  0xd5   : > { %4658 = vmatprep.mubr.msk.f32.mxu0 %vm318_vm1, %v302_v19 }
  0xd8   : > { %v303_v20 = vpop.trf.xlu0 }
  0xd9   : > { %4659 = vmatmul.mubr.msk.f32.gmra.mrb[16].mxu0 %vm318_vm1, %v303_v20 }
  0xdc   : > { %v304_v21 = vpop.trf.xlu0 }
  0xdd   : > { %4661 = vmatprep.mubr.msk.f32.mxu0 %vm318_vm1, %v304_v21 }
  0xe0   : > { %v305_v22 = vpop.trf.xlu0 }
  0xe1   : > { %4662 = vmatmul.mubr.msk.f32.gmra.mrb[18].mxu0 %vm318_vm1, %v305_v22 }
  0xe4   : > { %v306_v23 = vpop.trf.xlu0 }
  0xe5   : > { %4664 = vmatprep.mubr.msk.f32.mxu0 %vm318_vm1, %v306_v23 }
  0xe8   : > { %v307_v24 = vpop.trf.xlu0 }
  0xe9   : > { %4665 = vmatmul.mubr.msk.f32.gmra.mrb[20].mxu0 %vm318_vm1, %v307_v24 }
  0xec   : > { %v308_v25 = vpop.trf.xlu0 }
  0xed   : > { %4667 = vmatprep.mubr.msk.f32.mxu0 %vm318_vm1, %v308_v25 }
  0xf0   : > { %v309_v26 = vpop.trf.xlu0 }
  0xf1   : > { %4668 = vmatmul.mubr.msk.f32.gmra.mrb[22].mxu0 %vm318_vm1, %v309_v26 }
  0xf4   : > { %v310_v27 = vpop.trf.xlu0 }
  0xf5   : > { %4670 = vmatprep.mubr.msk.f32.mxu0 %vm318_vm1, %v310_v27 }
  0xf8   : > { %v311_v28 = vpop.trf.xlu0 }
  0xf9   : > { %4671 = vmatmul.mubr.msk.f32.gmra.mrb[24].mxu0 %vm318_vm1, %v311_v28 }
  0xfc   : > { %v312_v29 = vpop.trf.xlu0 }
  0xfd   : > { %4673 = vmatprep.mubr.msk.f32.mxu0 %vm318_vm1, %v312_v29 }
 0x100   : > { %v313_v30 = vpop.trf.xlu0 }
 0x101   : > { %4674 = vmatmul.mubr.msk.f32.gmra.mrb[26].mxu0 %vm318_vm1, %v313_v30 }
 0x104   : > { %v314_v31 = vpop.trf.xlu0 }
 0x105   : > { %4676 = vmatprep.mubr.msk.f32.mxu0 %vm318_vm1, %v314_v31 }
 0x108   : > { %v315_v32 = vpop.trf.xlu0 }
 0x109   : > { %4677 = vmatmul.mubr.msk.f32.gmra.mrb[28].mxu0 %vm318_vm1, %v315_v32 }
 0x10c   : > { %v316_v33 = vpop.trf.xlu0 }
 0x10d   : > { %4679 = vmatprep.mubr.msk.f32.mxu0 %vm318_vm1, %v316_v33 }
 0x110   : > { %v317_v34 = vpop.trf.xlu0 }
 0x111   : > { %4680 = vmatmul.mubr.msk.f32.gmra.mrb[30].mxu0 %vm318_vm1, %v317_v34  ;;  %v6556_v34 = vlaneseq }
 0x16c   : > { %v4636_v36 = vpop.f32.mrb[0].mxu0 }
 0x16d   : > { %v4842_v37 = vsub.f32 %v4839_v35, %v4636_v36  ;;  %v485_v38 = vpop.f32.mrb[1].mxu0 }
 0x16e   : > { %v4846_v39 = vsub.f32 %v4839_v35, %v485_v38 }
 0x16f   : > { %684 = vmin.xlane.f32.xlu1 %v4842_v37 }
 0x173   : > { %682 = vmin.xlane.f32.xlu1 %v4846_v39 }
 0x174   : > { %v4639_v40 = vpop.f32.mrb[2].mxu0 }
 0x175   : > { %v4850_v41 = vsub.f32 %v4839_v35, %v4639_v40  ;;  %v495_v42 = vpop.f32.mrb[3].mxu0  ;;  %v4961_v40 = vand.u32 127, %v6556_v34 }
 0x176   : > { %v4854_v43 = vsub.f32 %v4839_v35, %v495_v42 }
 0x177   : > { %688 = vmin.xlane.f32.xlu1 %v4850_v41  ;;  %6584 = vst [vmem:[#allocation3_spill] sm:$0xff] %v4961_v40 }
 0x17b   : > { %686 = vmin.xlane.f32.xlu1 %v4854_v43 }
 0x17c   : > { %v4642_v44 = vpop.f32.mrb[4].mxu0 }
 0x17d   : > { %v4858_v45 = vsub.f32 %v4839_v35, %v4642_v44  ;;  %v505_v46 = vpop.f32.mrb[5].mxu0 }
 0x17e   : > { %v4862_v47 = vsub.f32 %v4839_v35, %v505_v46 }
 0x17f   : > { %692 = vmin.xlane.f32.xlu1 %v4858_v45 }
 0x183   : > { %690 = vmin.xlane.f32.xlu1 %v4862_v47 }
 0x184   : > { %v4645_v48 = vpop.f32.mrb[6].mxu0 }
 0x185   : > { %v4866_v49 = vsub.f32 %v4839_v35, %v4645_v48  ;;  %v515_v50 = vpop.f32.mrb[7].mxu0 }
 0x186   : > { %v4870_v51 = vsub.f32 %v4839_v35, %v515_v50 }
 0x187   : > { %696 = vmin.xlane.f32.xlu1 %v4866_v49 }
 0x18b   : > { %694 = vmin.xlane.f32.xlu1 %v4870_v51 }
 0x18c   : > { %v4648_v52 = vpop.f32.mrb[8].mxu0 }
 0x18d   : > { %v525_v53 = vpop.f32.mrb[9].mxu0  ;;  %v4914_v17 = vsub.f32 %v4839_v35, %v4648_v52 }
 0x18e   : > { %v4906_v14 = vsub.f32 %v4839_v35, %v525_v53 }
 0x194   : > { %v4651_v54 = vpop.f32.mrb[10].mxu0 }
 0x195   : > { %v535_v55 = vpop.f32.mrb[11].mxu0  ;;  %v4922_v21 = vsub.f32 %v4839_v35, %v4651_v54 }
 0x196   : > { %v4918_v19 = vsub.f32 %v4839_v35, %v535_v55 }
 0x19c   : > { %v4654_v56 = vpop.f32.mrb[12].mxu0 }
 0x19d   : > { %v545_v57 = vpop.f32.mrb[13].mxu0  ;;  %v4930_v25 = vsub.f32 %v4839_v35, %v4654_v56 }
 0x19e   : > { %v4926_v23 = vsub.f32 %v4839_v35, %v545_v57 }
 0x1a4   : > { %v4657_v58 = vpop.f32.mrb[14].mxu0 }
 0x1a5   : > { %v555_v59 = vpop.f32.mrb[15].mxu0  ;;  %v4938_v29 = vsub.f32 %v4839_v35, %v4657_v58 }
 0x1a6   : > { %v4934_v27 = vsub.f32 %v4839_v35, %v555_v59 }
 0x1ac   : > { %v4660_v60 = vpop.f32.mrb[16].mxu0 }
 0x1ad   : > { %v4874_v61 = vsub.f32 %v4839_v35, %v4660_v60  ;;  %v565_v62 = vpop.f32.mrb[17].mxu0 }
 0x1ae   : > { %v4878_v63 = vsub.f32 %v4839_v35, %v565_v62 }
 0x1af   : > { %716 = vmin.xlane.f32.xlu1 %v4874_v61 }
 0x1b3   : > { %714 = vmin.xlane.f32.xlu1 %v4878_v63 }
 0x1b4   : > { %v4663_v0 = vpop.f32.mrb[18].mxu0 }
 0x1b5   : > { %v4882_v1 = vsub.f32 %v4839_v35, %v4663_v0  ;;  %v575_v3 = vpop.f32.mrb[19].mxu0 }
 0x1b6   : > { %v4886_v4 = vsub.f32 %v4839_v35, %v575_v3 }
 0x1b7   : > { %720 = vmin.xlane.f32.xlu1 %v4882_v1 }
 0x1bb   : > { %718 = vmin.xlane.f32.xlu1 %v4886_v4 }
 0x1bc   : > { %v4666_v5 = vpop.f32.mrb[20].mxu0 }
 0x1bd   : > { %v4890_v6 = vsub.f32 %v4839_v35, %v4666_v5  ;;  %v585_v7 = vpop.f32.mrb[21].mxu0 }
 0x1be   : > { %v4894_v8 = vsub.f32 %v4839_v35, %v585_v7 }
 0x1bf   : > { %724 = vmin.xlane.f32.xlu1 %v4890_v6 }
 0x1c3   : > { %722 = vmin.xlane.f32.xlu1 %v4894_v8 }
 0x1c4   : > { %v4669_v9 = vpop.f32.mrb[22].mxu0 }
 0x1c5   : > { %v4898_v10 = vsub.f32 %v4839_v35, %v4669_v9  ;;  %v595_v11 = vpop.f32.mrb[23].mxu0 }
 0x1c6   : > { %v4902_v12 = vsub.f32 %v4839_v35, %v595_v11 }
 0x1c7   : > { %728 = vmin.xlane.f32.xlu1 %v4898_v10 }
 0x1cb   : > { %726 = vmin.xlane.f32.xlu1 %v4902_v12 }
 0x1cc   : > { %v4672_v13 = vpop.f32.mrb[24].mxu0 }
 0x1cd   : > { %v4909_v15 = vsub.f32 %v4839_v35, %v4672_v13  ;;  %v605_v16 = vpop.f32.mrb[25].mxu0 }
 0x1ce   : > { %v4942_v30 = vsub.f32 %v4839_v35, %v605_v16 }
 0x1cf   : > { %698 = vmin.xlane.f32.xlu1 %v4906_v14  ;;  %732 = vmin.xlane.f32.xlu0 %v4909_v15 }
 0x1d3   : > { %700 = vmin.xlane.f32.xlu1 %v4914_v17 }
 0x1d4   : > { %v4675_v18 = vpop.f32.mrb[26].mxu0 }
 0x1d5   : > { %v615_v20 = vpop.f32.mrb[27].mxu0  ;;  %v4946_v31 = vsub.f32 %v4839_v35, %v4675_v18 }
 0x1d6   : > { %v4950_v32 = vsub.f32 %v4839_v35, %v615_v20 }
 0x1d7   : > { %702 = vmin.xlane.f32.xlu1 %v4918_v19 }
 0x1db   : > { %704 = vmin.xlane.f32.xlu1 %v4922_v21 }
 0x1dc   : > { %v4678_v22 = vpop.f32.mrb[28].mxu0 }
 0x1dd   : > { %v625_v24 = vpop.f32.mrb[29].mxu0  ;;  %v4954_v33 = vsub.f32 %v4839_v35, %v4678_v22 }
 0x1de   : > { %v4958_v38 = vsub.f32 %v4839_v35, %v625_v24 }
 0x1df   : > { %706 = vmin.xlane.f32.xlu1 %v4926_v23 }
 0x1e3   : > { %708 = vmin.xlane.f32.xlu1 %v4930_v25 }
 0x1e4   : > { %v4681_v26 = vpop.f32.mrb[30].mxu0 }
 0x1e5   : > { %v635_v28 = vpop.f32.mrb[31].mxu0  ;;  %v4966_v42 = vsub.f32 %v4839_v35, %v4681_v26 }
 0x1e6   : > { %v4974_v50 = vsub.f32 %v4839_v35, %v635_v28 }
 0x1e7   : > { %710 = vmin.xlane.f32.xlu1 %v4934_v27 }
 0x1eb   : > { %712 = vmin.xlane.f32.xlu1 %v4938_v29 }
 0x1ef   : > { %730 = vmin.xlane.f32.xlu1 %v4942_v30 }
 0x1f3   : > { %736 = vmin.xlane.f32.xlu1 %v4946_v31 }
 0x1f7   : > { %734 = vmin.xlane.f32.xlu1 %v4950_v32 }
 0x1fb   : > { %740 = vmin.xlane.f32.xlu1 %v4954_v33 }
 0x1fc   : > { %v685_v36 = vpop.xlane.xlu1 %684 }
 0x1fd   : > { %vm749_vm2 = vcmp.le.f32.partialorder %v4842_v37, %v685_v36 }
 0x1fe   : > { %v4969_v46 = vsel %vm749_vm2, %v4961_v40, 128 }
 0x1ff   : > { %738 = vmin.xlane.f32.xlu1 %v4958_v38  ;;  %v827_v52 = vshra.s32 %v4969_v46, 16 }
 0x200   : > { %v683_v44 = vpop.xlane.xlu1 %682 }
 0x201   : > { %vm748_vm3 = vcmp.le.f32.partialorder %v4846_v39, %v683_v44  ;;  %v4982_v54 = vcvt.s32.f32 %v827_v52 }
 0x202   : > { %v4978_v37 = vsel %vm748_vm3, %v4961_v40, 128 }
 0x203   : > { %744 = vmin.xlane.f32.xlu1 %v4966_v42  ;;  %v813_v39 = vshra.s32 %v4978_v37, 16 }
 0x204   : > { %v689_v48 = vpop.xlane.xlu1 %688 }
 0x205   : > { %vm751_vm4 = vcmp.le.f32.partialorder %v4850_v41, %v689_v48  ;;  %v4990_v56 = vcvt.s32.f32 %v813_v39 }
 0x206   : > { %v4986_v55 = vsel %vm751_vm4, %v4961_v40, 128 }
 0x207   : > { %742 = vmin.xlane.f32.xlu1 %v4974_v50  ;;  %v855_v57 = vshra.s32 %v4986_v55, 16 }
 0x208   : > { %v687_v53 = vpop.xlane.xlu1 %686 }
 0x209   : > { %vm750_vm5 = vcmp.le.f32.partialorder %v4854_v43, %v687_v53  ;;  %v4998_v59 = vcvt.s32.f32 %v855_v57 }
 0x20a   : > { %v4994_v41 = vsel %vm750_vm5, %v4961_v40, 128 }
 0x20b   : > { %830 = vmin.xlane.f32.xlu1 %v4982_v54  ;;  %v841_v60 = vshra.s32 %v4994_v41, 16 }
 0x20c   : > { %v693_v35 = vpop.xlane.xlu1 %692 }
 0x20d   : > { %v5005_v62 = vcvt.s32.f32 %v841_v60  ;;  %vm753_vm12 = vcmp.le.f32.partialorder %v4858_v45, %v693_v35 }
 0x20e   : > { %v5054_v57 = vsel %vm753_vm12, %v4961_v40, 128 }
 0x20f   : > { %816 = vmin.xlane.f32.xlu1 %v4990_v56  ;;  %v883_v60 = vshra.s32 %v5054_v57, 16 }
 0x210   : > { %v691_v58 = vpop.xlane.xlu1 %690 }
 0x211   : > { %vm752_vm6 = vcmp.le.f32.partialorder %v4862_v47, %v691_v58 }
 0x212   : > { %v5002_v43 = vsel %vm752_vm6, %v4961_v40, 128 }
 0x213   : > { %858 = vmin.xlane.f32.xlu1 %v4998_v59  ;;  %v869_v0 = vshra.s32 %v5002_v43, 16 }
 0x214   : > { %v697_v47 = vpop.xlane.xlu1 %696 }
 0x215   : > { %v5009_v3 = vcvt.s32.f32 %v869_v0  ;;  %vm755_vm15 = vcmp.le.f32.partialorder %v4866_v49, %v697_v47 }
 0x217   : > { %844 = vmin.xlane.f32.xlu1 %v5005_v62 }
 0x218   : > { %v695_v5 = vpop.xlane.xlu1 %694 }
 0x219   : > { %vm754_vm1 = vcmp.le.f32.partialorder %v4870_v51, %v695_v5 }
 0x21b   : > { %872 = vmin.xlane.f32.xlu1 %v5009_v3 }
 0x23c   : > { %v717_v7 = vpop.xlane.xlu1 %716 }
 0x23d   : > { %vm765_vm7 = vcmp.le.f32.partialorder %v4874_v61, %v717_v7  ;;  %v5072_v7 = vsel %vm755_vm15, %v4961_v40, 128 }
 0x23e   : > { %v5014_v9 = vsel %vm765_vm7, %v4961_v40, 128 }
 0x23f   : > { %v1051_v11 = vshra.s32 %v5014_v9, 16 }
 0x240   : > { %v715_v13 = vpop.xlane.xlu1 %714 }
 0x241   : > { %vm764_vm8 = vcmp.le.f32.partialorder %v4878_v63, %v715_v13  ;;  %v5018_v16 = vcvt.s32.f32 %v1051_v11  ;;  %v5079_v13 = vsel %vm754_vm1, %v4961_v40, 128 }
 0x242   : > { %v5021_v18 = vsel %vm764_vm8, %v4961_v40, 128 }
 0x243   : > { %1054 = vmin.xlane.f32.xlu1 %v5018_v16  ;;  %v1037_v20 = vshra.s32 %v5021_v18, 16 }
 0x244   : > { %v721_v22 = vpop.xlane.xlu1 %720 }
 0x245   : > { %vm767_vm9 = vcmp.le.f32.partialorder %v4882_v1, %v721_v22  ;;  %v5026_v61 = vcvt.s32.f32 %v1037_v20  ;;  %v911_v20 = vshra.s32 %v5072_v7, 16 }
 0x246   : > { %v5029_v24 = vsel %vm767_vm9, %v4961_v40, 128 }
 0x247   : > { %1040 = vmin.xlane.f32.xlu1 %v5026_v61  ;;  %v1079_v63 = vshra.s32 %v5029_v24, 16 }
 0x248   : > { %v719_v26 = vpop.xlane.xlu1 %718 }
 0x249   : > { %vm766_vm10 = vcmp.le.f32.partialorder %v4886_v4, %v719_v26  ;;  %v5034_v28 = vcvt.s32.f32 %v1079_v63  ;;  %v897_v63 = vshra.s32 %v5079_v13, 16 }
 0x24a   : > { %v5037_v36 = vsel %vm766_vm10, %v4961_v40, 128 }
 0x24b   : > { %1082 = vmin.xlane.f32.xlu1 %v5034_v28  ;;  %v1065_v1 = vshra.s32 %v5037_v36, 16 }
 0x24c   : > { %v725_v44 = vpop.xlane.xlu1 %724 }
 0x24d   : > { %vm769_vm11 = vcmp.le.f32.partialorder %v4890_v6, %v725_v44  ;;  %v5042_v48 = vcvt.s32.f32 %v1065_v1  ;;  %v5099_v44 = vcvt.s32.f32 %v897_v63 }
 0x24e   : > { %v5045_v52 = vsel %vm769_vm11, %v4961_v40, 128 }
 0x24f   : > { %1068 = vmin.xlane.f32.xlu1 %v5042_v48  ;;  %v1107_v4 = vshra.s32 %v5045_v52, 16 }
 0x250   : > { %v723_v53 = vpop.xlane.xlu1 %722 }
 0x251   : > { %vm768_vm13 = vcmp.le.f32.partialorder %v4894_v8, %v723_v53  ;;  %v5051_v39 = vcvt.s32.f32 %v1107_v4  ;;  %v5101_v4 = vcvt.s32.f32 %v911_v20 }
 0x252   : > { %v5057_v6 = vsel %vm768_vm13, %v4961_v40, 128 }
 0x253   : > { %1110 = vmin.xlane.f32.xlu1 %v5051_v39  ;;  %v1093_v58 = vshra.s32 %v5057_v6, 16 }
 0x254   : > { %v729_v45 = vpop.xlane.xlu1 %728 }
 0x255   : > { %vm771_vm14 = vcmp.le.f32.partialorder %v4898_v10, %v729_v45  ;;  %v5062_v35 = vcvt.s32.f32 %v1093_v58  ;;  %v5075_v10 = vcvt.s32.f32 %v883_v60 }
 0x256   : > { %v5067_v8 = vsel %vm771_vm14, %v4961_v40, 128 }
 0x257   : > { %1096 = vmin.xlane.f32.xlu1 %v5062_v35  ;;  %v1135_v11 = vshra.s32 %v5067_v8, 16 }
 0x258   : > { %v727_v0 = vpop.xlane.xlu1 %726 }
 0x259   : > { %vm770_vm2 = vcmp.le.f32.partialorder %v4902_v12, %v727_v0  ;;  %v5090_v22 = vcvt.s32.f32 %v1135_v11 }
 0x25a   : > { %v5082_v49 = vsel %vm770_vm2, %v4961_v40, 128 }
 0x25b   : > { %886 = vmin.xlane.f32.xlu1 %v5075_v10  ;;  %v1121_v51 = vshra.s32 %v5082_v49, 16 }
 0x25c   : > { %v699_v47 = vpop.xlane.xlu1 %698  ;;  %v733_v5 = vpop.xlane.xlu0 %732 }
 0x25d   : > { %vm773_vm3 = vcmp.le.f32.partialorder %v4909_v15, %v733_v5  ;;  %v5088_v12 = vcvt.s32.f32 %v1121_v51  ;;  %vm756_vm5 = vcmp.le.f32.partialorder %v4906_v14, %v699_v47 }
 0x25e   : > { %v5094_v26 = vsel %vm773_vm3, %v4961_v40, 128 }
 0x25f   : > { %1124 = vmin.xlane.f32.xlu0 %v5088_v12  ;;  %1138 = vmin.xlane.f32.xlu1 %v5090_v22  ;;  %v1163_v15 = vshra.s32 %v5094_v26, 16 }
 0x260   : > { %v701_v1 = vpop.xlane.xlu1 %700 }
 0x261   : > { %vm757_vm4 = vcmp.le.f32.partialorder %v4914_v17, %v701_v1  ;;  %v5109_v45 = vcvt.s32.f32 %v1163_v15  ;;  %v5121_v1 = vsel %vm756_vm5, %v4961_v40, 128 }
 0x262   : > { %v5105_v53 = vsel %vm757_vm4, %v4961_v40, 128  ;;  %6585 = vst [vmem:[#allocation4_spill] sm:$0xff] %v5121_v1  ;;  %v925_v14 = vshra.s32 %v5121_v1, 16 }
 0x263   : > { %900 = vmin.xlane.f32.xlu0 %v5099_v44  ;;  %914 = vmin.xlane.f32.xlu1 %v5101_v4  ;;  %v939_v60 = vshra.s32 %v5105_v53, 16 }
 0x264   : > { %v703_v58 = vpop.xlane.xlu1 %702 }
 0x265   : > { %v5113_v0 = vcvt.s32.f32 %v939_v60  ;;  %vm758_vm9 = vcmp.le.f32.partialorder %v4918_v19, %v703_v58 }
 0x267   : > { %1166 = vmin.xlane.f32.xlu1 %v5109_v45 }
 0x268   : > { %v705_v17 = vpop.xlane.xlu1 %704 }
 0x269   : > { %vm759_vm7 = vcmp.le.f32.partialorder %v4922_v21, %v705_v17 }
 0x26a   : > { %v5133_v47 = vsel %vm759_vm7, %v4961_v40, 128 }
 0x26b   : > { %942 = vmin.xlane.f32.xlu1 %v5113_v0 }
 0x26c   : > { %v707_v11 = vpop.xlane.xlu1 %706 }
 0x26d   : > { %vm760_vm13 = vcmp.le.f32.partialorder %v4926_v23, %v707_v11 }
 0x270   : > { %v709_v51 = vpop.xlane.xlu1 %708 }
 0x271   : > { %vm761_vm11 = vcmp.le.f32.partialorder %v4930_v25, %v709_v51 }
 0x274   : > { %v5116_v5 = vpop.xlane.xlu1 %710 }
 0x275   : > { %vm762_vm2 = vcmp.le.f32.partialorder %v4934_v27, %v5116_v5 }
 0x278   : > { %v713_v20 = vpop.xlane.xlu1 %712 }
 0x279   : > { %vm763_vm15 = vcmp.le.f32.partialorder %v4938_v29, %v713_v20 }
 0x27c   : > { %v731_v63 = vpop.xlane.xlu1 %730 }
 0x27d   : > { %vm772_vm6 = vcmp.le.f32.partialorder %v4942_v30, %v731_v63  ;;  %v967_v63 = vshra.s32 %v5133_v47, 16 }
 0x27e   : > { %v5124_v15 = vsel %vm772_vm6, %v4961_v40, 128 }
 0x27f   : > { %v1149_v60 = vshra.s32 %v5124_v15, 16 }
 0x280   : > { %v737_v34 = vpop.xlane.xlu1 %736 }
 0x281   : > { %vm775_vm8 = vcmp.le.f32.partialorder %v4946_v31, %v737_v34  ;;  %v5129_v2 = vcvt.s32.f32 %v1149_v60  ;;  %v5142_v31 = vcvt.s32.f32 %v925_v14  ;;  %v5148_v60 = vsel %vm758_vm9, %v4961_v40, 128 }
 0x282   : > { %v5136_v30 = vsel %vm775_vm8, %v4961_v40, 128  ;;  %6586 = vst [vmem:[#allocation5_spill] sm:$0xff] %v5148_v60  ;;  %v5160_v14 = vcvt.s32.f32 %v967_v63 }
 0x283   : > { %1152 = vmin.xlane.f32.xlu0 %v5129_v2  ;;  %v1191_v21 = vshra.s32 %v5136_v30, 16 }
 0x284   : > { %v735_v17 = vpop.xlane.xlu1 %734 }
 0x285   : > { %vm774_vm10 = vcmp.le.f32.partialorder %v4950_v32, %v735_v17  ;;  %v5144_v34 = vcvt.s32.f32 %v1191_v21  ;;  %v953_v21 = vshra.s32 %v5148_v60, 16  ;;  %v5164_v17 = vsel %vm761_vm11, %v4961_v40, 128 }
 0x286   : > { %v5151_v1 = vsel %vm774_vm10, %v4961_v40, 128  ;;  %6587 = vst [vmem:[#allocation6_spill] sm:$0xff] %v5164_v17  ;;  %v995_v63 = vshra.s32 %v5164_v17, 16  ;;  %v5180_v60 = vsel %vm760_vm13, %v4961_v40, 128 }
 0x287   : > { %928 = vmin.xlane.f32.xlu0 %v5142_v31  ;;  %1194 = vmin.xlane.f32.xlu1 %v5144_v34  ;;  %v1177_v19 = vshra.s32 %v5151_v1, 16  ;;  %6588 = vst [vmem:[#allocation7_spill] sm:$0xff] %v5180_v60 }
 0x288   : > { %v741_v32 = vpop.xlane.xlu1 %740 }
 0x289   : > { %vm777_vm12 = vcmp.le.f32.partialorder %v4954_v33, %v741_v32  ;;  %v5158_v58 = vcvt.s32.f32 %v1177_v19  ;;  %v5175_v19 = vcvt.s32.f32 %v953_v21  ;;  %v5192_v21 = vcvt.s32.f32 %v995_v63 }
 0x28a   : > { %v5167_v25 = vsel %vm777_vm12, %v4961_v40, 128 }
 0x28b   : > { %v1219_v51 = vshra.s32 %v5167_v25, 16  ;;  %1180 = vmin.xlane.f32.xlu0 %v5158_v58  ;;  %970 = vmin.xlane.f32.xlu1 %v5160_v14  ;;  %6590 = vst [vmem:[#allocation9_spill] sm:$0xff] %v5192_v21 }
 0x28c   : > { %v739_v33 = vpop.xlane.xlu1 %738 }
 0x28d   : > { %vm776_vm14 = vcmp.le.f32.partialorder %v4958_v38, %v739_v33  ;;  %v5177_v32 = vcvt.s32.f32 %v1219_v51  ;;  %v981_v51 = vshra.s32 %v5180_v60, 16  ;;  %v5196_v33 = vsel %vm763_vm15, %v4961_v40, 128 }
 0x28e   : > { %v5183_v23 = vsel %vm776_vm14, %v4961_v40, 128  ;;  %6591 = vst [vmem:[#allocation10_spill] sm:$0xff] %v5196_v33  ;;  %v5213_v60 = vsel %vm762_vm2, %v4961_v40, 128 }
 0x28f   : > { %956 = vmin.xlane.f32.xlu0 %v5175_v19  ;;  %1222 = vmin.xlane.f32.xlu1 %v5177_v32  ;;  %v1205_v11 = vshra.s32 %v5183_v23, 16  ;;  %v5208_v63 = vcvt.s32.f32 %v981_v51  ;;  %6594 = vst [vmem:[#allocation13_spill] sm:$0xff] %v5213_v60 }
 0x290   : > { %v745_v17 = vpop.xlane.xlu1 %744 }
 0x291   : > { %vm779_vm1 = vcmp.le.f32.partialorder %v4966_v42, %v745_v17  ;;  %v5190_v38 = vcvt.s32.f32 %v1205_v11  ;;  %v1023_v17 = vshra.s32 %v5196_v33, 16  ;;  %6592 = vst [vmem:[#allocation11_spill] sm:$0xff] %v5208_v63 }
 0x292   : > { %v5199_v29 = vsel %vm779_vm1, %v4961_v40, 128 }
 0x293   : > { %6589 = vst [vmem:[#allocation8_spill] sm:$0xff] %v5190_v38  ;;  %v1247_v20 = vshra.s32 %v5199_v29, 16  ;;  %1208 = vmin.xlane.f32.xlu0 %v5190_v38  ;;  %998 = vmin.xlane.f32.xlu1 %v5192_v21  ;;  %v5223_v33 = vcvt.s32.f32 %v1023_v17  ;;  %v1050_v17 = vand.u32 65535, %v5014_v9 }
 0x294   : > { %v743_v42 = vpop.xlane.xlu1 %742 }
 0x295   : > { %vm778_vm3 = vcmp.le.f32.partialorder %v4974_v50, %v743_v42  ;;  %v5210_v11 = vcvt.s32.f32 %v1247_v20  ;;  %6597 = vst [vmem:[#allocation16_spill] sm:$0xff] %v5223_v33  ;;  %v1009_v50 = vshra.s32 %v5213_v60, 16 }
 0x296   : > { %v5216_v27 = vsel %vm778_vm3, %v4961_v40, 128 }
 0x297   : > { %6593 = vst [vmem:[#allocation12_spill] sm:$0xff] %v5210_v11  ;;  %6595 = vst [vmem:[#allocation14_spill] sm:$0xff] %v5216_v27  ;;  %984 = vmin.xlane.f32.xlu0 %v5208_v63  ;;  %1250 = vmin.xlane.f32.xlu1 %v5210_v11  ;;  %v1233_v5 = vshra.s32 %v5216_v27, 16  ;;  %v5228_v51 = vcvt.s32.f32 %v1009_v50  ;;  %v1052_v50 = vcvt.s32.f32 %v1050_v17  ;;  %v1078_v11 = vand.u32 65535, %v5029_v24 }
 0x298   : > { %v5231_v20 = vpop.xlane.xlu1 %830 }
 0x299   : > { %v5221_v38 = vcvt.s32.f32 %v1233_v5  ;;  %6598 = vst [vmem:[#allocation17_spill] sm:$0xff] %v5228_v51  ;;  %vm832_vm5 = vcmp.eq.f32.partialorder %v4982_v54, %v5231_v20  ;;  %v854_v54 = vand.u32 65535, %v4986_v55 }
 0x29b   : > { %6596 = vst [vmem:[#allocation15_spill] sm:$0xff] %v5221_v38  ;;  %1236 = vmin.xlane.f32.xlu0 %v5221_v38  ;;  %1026 = vmin.xlane.f32.xlu1 %v5223_v33  ;;  %v826_v38 = vand.u32 65535, %v4969_v46  ;;  %v1036_v33 = vand.u32 65535, %v5021_v18  ;;  %v812_v46 = vand.u32 65535, %v4978_v37 }
 0x29c   : > { %v5233_v42 = vpop.xlane.xlu1 %816 }
 0x29d   : > { %v1038_v27 = vcvt.s32.f32 %v1036_v33  ;;  %v828_v21 = vcvt.s32.f32 %v826_v38  ;;  %vm818_vm7 = vcmp.eq.f32.partialorder %v4990_v56, %v5233_v42  ;;  %v814_v24 = vcvt.s32.f32 %v812_v46 }
 0x29e   : > { %v1064_v38 = vand.u32 65535, %v5037_v36  ;;  %v1106_v56 = vand.u32 65535, %v5045_v52  ;;  %v856_v33 = vcvt.s32.f32 %v854_v54 }
 0x29f   : > { %1012 = vmin.xlane.f32.xlu0 %v5228_v51  ;;  %v833_v17 = vsel %vm832_vm5, %v828_v21, inf  ;;  %v819_v37 = vsel %vm818_vm7, %v814_v24, inf }
 0x2a0   : > { %v5235_v40 = vpop.xlane.xlu1 %858  ;;  %v1066_v55 = vcvt.s32.f32 %v1064_v38  ;;  %v1108_v52 = vcvt.s32.f32 %v1106_v56 }
 0x2a1   : > { %vm860_vm9 = vcmp.eq.f32.partialorder %v4998_v59, %v5235_v40 }
 0x2a4   : > { %v5237_v5 = vpop.xlane.xlu1 %844 }
 0x2a5   : > { %vm846_vm11 = vcmp.eq.f32.partialorder %v5005_v62, %v5237_v5  ;;  %v868_v62 = vand.u32 65535, %v5002_v43 }
 0x2a8   : > { %v5240_v63 = vpop.xlane.xlu1 %872 }
 0x2a9   : > { %vm874_vm14 = vcmp.eq.f32.partialorder %v5009_v3, %v5240_v63 }
 0x2d0   : > { %v5243_v60 = vpop.xlane.xlu1 %1054 }
 0x2d1   : > { %vm1056_vm4 = vcmp.eq.f32.partialorder %v5018_v16, %v5243_v60 }
 0x2d2   : > { %v1057_v51 = vsel %vm1056_vm4, %v1052_v50, inf  ;;  %v1092_v50 = vand.u32 65535, %v5057_v6  ;;  %v1120_v6 = vand.u32 65535, %v5082_v49 }
 0x2d3   : > { %1058 = vmin.xlane.f32.xlu1 %v1057_v51  ;;  %v1080_v51 = vcvt.s32.f32 %v1078_v11  ;;  %v840_v11 = vand.u32 65535, %v4994_v41 }
 0x2d4   : > { %v5251_v9 = vpop.xlane.xlu1 %1040 }
 0x2d5   : > { %vm1042_vm6 = vcmp.eq.f32.partialorder %v5026_v61, %v5251_v9  ;;  %v842_v59 = vcvt.s32.f32 %v840_v11 }
 0x2d6   : > { %v1043_v18 = vsel %vm1042_vm6, %v1038_v27, inf }
 0x2d7   : > { %1044 = vmin.xlane.f32.xlu0 %v1043_v18  ;;  %834 = vmin.xlane.f32.xlu1 %v833_v17  ;;  %v847_v41 = vsel %vm846_vm11, %v842_v59, inf  ;;  %v1094_v17 = vcvt.s32.f32 %v1092_v50  ;;  %v4741_v59 = vmov 0  }
 0x2d8   : > { %v5259_v16 = vpop.xlane.xlu1 %1082  ;;  %4728 = vset.pattern.permute.xlu1 %v4741_v59  ;;  %4729 = vset.pattern.permute.xlu0 %v4741_v59 }
 0x2d9   : > { %vm1084_vm8 = vcmp.eq.f32.partialorder %v5034_v28, %v5259_v16  ;;  %v861_v28 = vsel %vm860_vm9, %v856_v33, inf }
 0x2da   : > { %v1085_v61 = vsel %vm1084_vm8, %v1080_v51, inf }
 0x2db   : > { %820 = vmin.xlane.f32.xlu0 %v819_v37  ;;  %1086 = vmin.xlane.f32.xlu1 %v1085_v61  ;;  %v896_v37 = vand.u32 65535, %v5079_v13  ;;  %v1122_v61 = vcvt.s32.f32 %v1120_v6 }
 0x2dc   : > { %v5267_v21 = vpop.xlane.xlu1 %1068 }
 0x2dd   : > { %vm1070_vm10 = vcmp.eq.f32.partialorder %v5042_v48, %v5267_v21  ;;  %v882_v48 = vand.u32 65535, %v5054_v57  ;;  %v870_v57 = vcvt.s32.f32 %v868_v62  ;;  %v898_v11 = vcvt.s32.f32 %v896_v37 }
 0x2de   : > { %v1071_v36 = vsel %vm1070_vm10, %v1066_v55, inf }
 0x2df   : > { %1072 = vmin.xlane.f32.xlu0 %v1071_v36  ;;  %862 = vmin.xlane.f32.xlu1 %v861_v28  ;;  %v884_v51 = vcvt.s32.f32 %v882_v48  ;;  %v875_v43 = vsel %vm874_vm14, %v870_v57, inf  ;;  %v938_v28 = vand.u32 65535, %v5105_v53  ;;  %v1148_v53 = vand.u32 65535, %v5124_v15 }
 0x2e0   : > { %v5274_v27 = vpop.xlane.xlu1 %1110  ;;  %v1190_v48 = vand.u32 65535, %v5136_v30 }
 0x2e1   : > { %vm1112_vm12 = vcmp.eq.f32.partialorder %v5051_v39, %v5274_v27  ;;  %v1134_v39 = vand.u32 65535, %v5067_v8  ;;  %v1150_v62 = vcvt.s32.f32 %v1148_v53 }
 0x2e2   : > { %v1113_v46 = vsel %vm1112_vm12, %v1108_v52, inf  ;;  %v1192_v15 = vcvt.s32.f32 %v1190_v48 }
 0x2e3   : > { %848 = vmin.xlane.f32.xlu0 %v847_v41  ;;  %1114 = vmin.xlane.f32.xlu1 %v1113_v46  ;;  %v1136_v49 = vcvt.s32.f32 %v1134_v39  ;;  %v6599_v41 = vld [vmem:[#allocation4_spill] sm:$0xff] }
 0x2e4   : > { %v5280_v18 = vpop.xlane.xlu1 %1096  ;;  %v924_v46 = vand.u32 65535, %v6599_v41  ;;  %v6606_v41 = vld [vmem:[#allocation14_spill] sm:$0xff] }
 0x2e5   : > { %vm1098_vm13 = vcmp.eq.f32.partialorder %v5062_v35, %v5280_v18  ;;  %v910_v35 = vand.u32 65535, %v5072_v7  ;;  %v1162_v7 = vand.u32 65535, %v5094_v26 }
 0x2e6   : > { %v1099_v54 = vsel %vm1098_vm13, %v1094_v17, inf  ;;  %v926_v57 = vcvt.s32.f32 %v924_v46 }
 0x2e7   : > { %1100 = vmin.xlane.f32.xlu0 %v1099_v54  ;;  %v912_v33 = vcvt.s32.f32 %v910_v35  ;;  %v1164_v36 = vcvt.s32.f32 %v1162_v7  ;;  %v966_v54 = vand.u32 65535, %v5133_v47 }
 0x2e8   : > { %v5289_v24 = vpop.xlane.xlu1 %886 }
 0x2e9   : > { %vm888_vm15 = vcmp.eq.f32.partialorder %v5075_v10, %v5289_v24  ;;  %v968_v35 = vcvt.s32.f32 %v966_v54  ;;  %v6607_v54 = vld [vmem:[#allocation12_spill] sm:$0xff] }
 0x2ea   : > { %v889_v38 = vsel %vm888_vm15, %v884_v51, inf  ;;  %v6600_v51 = vld [vmem:[#allocation5_spill] sm:$0xff] }
 0x2eb   : > { %876 = vmin.xlane.f32.xlu0 %v875_v43  ;;  %890 = vmin.xlane.f32.xlu1 %v889_v38  ;;  %v952_v47 = vand.u32 65535, %v6600_v51 }
 0x2ec   : > { %v5295_v3 = vpop.xlane.xlu1 %1138  ;;  %v5297_v8 = vpop.xlane.xlu0 %1124 }
 0x2ed   : > { %vm1140_vm1 = vcmp.eq.f32.partialorder %v5090_v22, %v5295_v3  ;;  %vm1126_vm2 = vcmp.eq.f32.partialorder %v5088_v12, %v5297_v8 }
 0x2ee   : > { %v1141_v10 = vsel %vm1140_vm1, %v1136_v49, inf  ;;  %v1127_v56 = vsel %vm1126_vm2, %v1122_v61, inf  ;;  %v6601_v49 = vld [vmem:[#allocation6_spill] sm:$0xff] }
 0x2ef   : > { %1142 = vmin.xlane.f32.xlu1 %v1141_v10  ;;  %1128 = vmin.xlane.f32.xlu0 %v1127_v56  ;;  %v994_v61 = vand.u32 65535, %v6601_v49 }
 0x2f0   : > { %v5304_v55 = vpop.xlane.xlu1 %914  ;;  %v5306_v13 = vpop.xlane.xlu0 %900 }
 0x2f1   : > { %vm916_vm3 = vcmp.eq.f32.partialorder %v5101_v4, %v5304_v55  ;;  %vm902_vm4 = vcmp.eq.f32.partialorder %v5099_v44, %v5306_v13  ;;  %v940_v44 = vcvt.s32.f32 %v938_v28  ;;  %v996_v28 = vcvt.s32.f32 %v994_v61 }
 0x2f2   : > { %v917_v22 = vsel %vm916_vm3, %v912_v33, inf  ;;  %v903_v12 = vsel %vm902_vm4, %v898_v11, inf  ;;  %v954_v33 = vcvt.s32.f32 %v952_v47  ;;  %v6602_v11 = vld [vmem:[#allocation7_spill] sm:$0xff] }
 0x2f3   : > { %918 = vmin.xlane.f32.xlu1 %v917_v22  ;;  %904 = vmin.xlane.f32.xlu0 %v903_v12  ;;  %v980_v22 = vand.u32 65535, %v6602_v11  ;;  %v865_v11 = vcvt.f32.s32 %v5235_v40 }
 0x2f4   : > { %v5313_v26 = vpop.xlane.xlu1 %1166 }
 0x2f5   : > { %vm1168_vm5 = vcmp.eq.f32.partialorder %v5109_v45, %v5313_v26 }
 0x2f6   : > { %v1169_v52 = vsel %vm1168_vm5, %v1164_v36, inf }
 0x2f7   : > { %1170 = vmin.xlane.f32.xlu1 %v1169_v52  ;;  %v6603_v52 = vld [vmem:[#allocation9_spill] sm:$0xff] }
 0x2f8   : > { %v5317_v4 = vpop.xlane.xlu1 %942 }
 0x2f9   : > { %vm944_vm6 = vcmp.eq.f32.partialorder %v5113_v0, %v5317_v4  ;;  %v1176_v0 = vand.u32 65535, %v5151_v1  ;;  %v1218_v1 = vand.u32 65535, %v5167_v25  ;;  %v1204_v25 = vand.u32 65535, %v5183_v23 }
 0x2fa   : > { %v945_v50 = vsel %vm944_vm6, %v940_v44, inf  ;;  %v1246_v23 = vand.u32 65535, %v5199_v29  ;;  %v1232_v29 = vand.u32 65535, %v6606_v41 }
 0x2fb   : > { %946 = vmin.xlane.f32.xlu1 %v945_v50  ;;  %v1178_v37 = vcvt.s32.f32 %v1176_v0  ;;  %v1220_v7 = vcvt.s32.f32 %v1218_v1  ;;  %v1206_v59 = vcvt.s32.f32 %v1204_v25  ;;  %v6605_v50 = vld [vmem:[#allocation10_spill] sm:$0xff]  ;;  %v6608_v0 = vld [vmem:[#allocation11_spill] sm:$0xff] }
 0x2fc   : > { %v1022_v53 = vand.u32 65535, %v6605_v50 }
 0x2fe   : > { %v1024_v1 = vcvt.s32.f32 %v1022_v53 }
 0x310   : > { %v5324_v17 = vpop.xlane.xlu0 %1152 }
 0x311   : > { %vm1154_vm7 = vcmp.eq.f32.partialorder %v5129_v2, %v5324_v17 }
 0x312   : > { %v1155_v45 = vsel %vm1154_vm7, %v1150_v62, inf  ;;  %v1248_v62 = vcvt.s32.f32 %v1246_v23  ;;  %v879_v23 = vcvt.f32.s32 %v5240_v63  ;;  %v5408_v63 = vshll.u32 %v865_v11, 16 }
 0x313   : > { %1156 = vmin.xlane.f32.xlu0 %v1155_v45  ;;  %v982_v45 = vcvt.s32.f32 %v980_v22  ;;  %v851_v22 = vcvt.f32.s32 %v5237_v5 }
 0x314   : > { %v5330_v39 = vpop.xlane.xlu1 %1194  ;;  %v5332_v6 = vpop.xlane.xlu0 %928 }
 0x315   : > { %vm1196_vm8 = vcmp.eq.f32.partialorder %v5144_v34, %v5330_v39  ;;  %vm930_vm9 = vcmp.eq.f32.partialorder %v5142_v31, %v5332_v6 }
 0x316   : > { %v1197_v30 = vsel %vm1196_vm8, %v1192_v15, inf  ;;  %v931_v2 = vsel %vm930_vm9, %v926_v57, inf }
 0x317   : > { %1198 = vmin.xlane.f32.xlu1 %v1197_v30  ;;  %932 = vmin.xlane.f32.xlu0 %v931_v2  ;;  %v6609_v30 = vld [vmem:[#allocation13_spill] sm:$0xff] }
 0x318   : > { %v5340_v43 = vpop.xlane.xlu1 %970  ;;  %v5342_v38 = vpop.xlane.xlu0 %1180  ;;  %v1008_v2 = vand.u32 65535, %v6609_v30  ;;  %v907_v30 = vcvt.f32.s32 %v5306_v13 }
 0x319   : > { %vm972_vm10 = vcmp.eq.f32.partialorder %v5160_v14, %v5340_v43  ;;  %vm1182_vm11 = vcmp.eq.f32.partialorder %v5158_v58, %v5342_v38  ;;  %v977_v11 = vcvt.f32.s32 %v5340_v43 }
 0x31a   : > { %v973_v31 = vsel %vm972_vm10, %v968_v35, inf  ;;  %v1183_v34 = vsel %vm1182_vm11, %v1178_v37, inf  ;;  %v1234_v35 = vcvt.s32.f32 %v1232_v29  ;;  %v6610_v37 = vld [vmem:[#allocation16_spill] sm:$0xff]  ;;  %v1010_v25 = vcvt.s32.f32 %v1008_v2 }
 0x31b   : > { %974 = vmin.xlane.f32.xlu1 %v973_v31  ;;  %1184 = vmin.xlane.f32.xlu0 %v1183_v34  ;;  %v6611_v31 = vld [vmem:[#allocation15_spill] sm:$0xff]  ;;  %v1103_v29 = vcvt.f32.s32 %v5280_v18 }
 0x31c   : > { %v5350_v10 = vpop.xlane.xlu1 %1222  ;;  %v5352_v56 = vpop.xlane.xlu0 %956 }
 0x31d   : > { %vm1224_vm12 = vcmp.eq.f32.partialorder %v5177_v32, %v5350_v10  ;;  %vm958_vm13 = vcmp.eq.f32.partialorder %v5175_v19, %v5352_v56  ;;  %v6604_v32 = vld [vmem:[#allocation8_spill] sm:$0xff] }
 0x31e   : > { %v1225_v58 = vsel %vm1224_vm12, %v1220_v7, inf  ;;  %v959_v14 = vsel %vm958_vm13, %v954_v33, inf  ;;  %v6612_v7 = vld [vmem:[#allocation17_spill] sm:$0xff] }
 0x31f   : > { %1226 = vmin.xlane.f32.xlu1 %v1225_v58  ;;  %960 = vmin.xlane.f32.xlu0 %v959_v14  ;;  %v837_v58 = vcvt.f32.s32 %v5231_v20  ;;  %v823_v14 = vcvt.f32.s32 %v5233_v42  ;;  %v4742_v42 = vmov 1966171168  }
 0x320   : > { %v5360_v12 = vpop.xlane.xlu1 %998  ;;  %v5362_v36 = vpop.xlane.xlu0 %1208  ;;  %v2461_v50 = vunpack.c.l.s4 %v4742_v42 }
 0x321   : > { %vm1000_vm14 = vcmp.eq.f32.partialorder %v6603_v52, %v5360_v12  ;;  %vm1210_vm15 = vcmp.eq.f32.partialorder %v6604_v32, %v5362_v36  ;;  %v1089_v52 = vcvt.f32.s32 %v5259_v16  ;;  %v1075_v32 = vcvt.f32.s32 %v5267_v21 }
 0x322   : > { %v1001_v19 = vsel %vm1000_vm14, %v996_v28, inf  ;;  %v1211_v44 = vsel %vm1210_vm15, %v1206_v59, inf  ;;  %v1061_v28 = vcvt.f32.s32 %v5243_v60  ;;  %v1047_v59 = vcvt.f32.s32 %v5251_v9 }
 0x323   : > { %1002 = vmin.xlane.f32.xlu1 %v1001_v19  ;;  %1212 = vmin.xlane.f32.xlu0 %v1211_v44  ;;  %v1117_v19 = vcvt.f32.s32 %v5274_v27  ;;  %v6613_v44 = vlaneseq  ;;  %v5404_v40 = vshll.u32 %v837_v58, 16  ;;  %v5406_v5 = vshll.u32 %v823_v14, 16 }
 0x324   : > { %v5370_v46 = vpop.xlane.xlu1 %1250  ;;  %v5372_v48 = vpop.xlane.xlu0 %984  ;;  %v5410_v60 = vshll.u32 %v851_v22, 16  ;;  %v5412_v9 = vshll.u32 %v879_v23, 16  ;;  %v1062_v16 = vshll.u32 %v1061_v28, 16  ;;  %v5414_v53 = vshll.u32 %v1047_v59, 16 }
 0x325   : > { %vm1252_vm1 = vcmp.eq.f32.partialorder %v6607_v54, %v5370_v46  ;;  %vm986_vm2 = vcmp.eq.f32.partialorder %v6608_v0, %v5372_v48  ;;  %v5402_v20 = vshrl.u32 %v6613_v44, 7  ;;  %v5416_v21 = vshll.u32 %v1089_v52, 16 }
 0x326   : > { %v1253_v15 = vsel %vm1252_vm1, %v1248_v62, inf  ;;  %v987_v57 = vsel %vm986_vm2, %v982_v45, inf  ;;  %v5418_v27 = vshll.u32 %v1075_v32, 16  ;;  %v5420_v41 = vshll.u32 %v1117_v19, 16 }
 0x327   : > { %1254 = vmin.xlane.f32.xlu1 %v1253_v15  ;;  %988 = vmin.xlane.f32.xlu0 %v987_v57  ;;  %6614 = vst [vmem:[#allocation4_spill] sm:$0xff] %v5402_v20  ;;  %v893_v62 = vcvt.f32.s32 %v5289_v24  ;;  %v1145_v45 = vcvt.f32.s32 %v5295_v3  ;;  %v1131_v54 = vcvt.f32.s32 %v5297_v8  ;;  %v5427_v0 = vsub.s32 0, %v5402_v20 }
 0x328   : > { %v5379_v51 = vpop.xlane.xlu1 %1026  ;;  %v5381_v47 = vpop.xlane.xlu0 %1236  ;;  %v2462_v15 = vunpack.c.0.s8 %v2461_v50  ;;  %v921_v57 = vcvt.f32.s32 %v5304_v55  ;;  %v5432_v2 = vsub.s32 1, %v5402_v20  ;;  %v5438_v18 = vsub.s32 3, %v5402_v20 }
 0x329   : > { %vm1028_vm3 = vcmp.eq.f32.partialorder %v6610_v37, %v5379_v51  ;;  %vm1238_vm4 = vcmp.eq.f32.partialorder %v6611_v31, %v5381_v47  ;;  %v5441_v24 = vsub.s32 4, %v5402_v20  ;;  %v5444_v3 = vsub.s32 5, %v5402_v20 }
 0x32a   : > { %v1029_v34 = vsel %vm1028_vm3, %v1024_v1, inf  ;;  %v1239_v49 = vsel %vm1238_vm4, %v1234_v35, inf  ;;  %v5435_v1 = vsub.s32 2, %v5402_v20  ;;  %v5447_v8 = vsub.s32 6, %v5402_v20 }
 0x32b   : > { %1030 = vmin.xlane.f32.xlu1 %v1029_v34  ;;  %1240 = vmin.xlane.f32.xlu0 %v1239_v49  ;;  %v5449_v55 = vshll.u32 %v1103_v29, 16  ;;  %v5451_v13 = vshll.u32 %v893_v62, 16  ;;  %v1173_v35 = vcvt.f32.s32 %v5313_v26  ;;  %v5455_v37 = vsub.s32 7, %v5402_v20 }
 0x32c   : > { %v5387_v61 = vpop.xlane.xlu0 %1012  ;;  %v5457_v31 = vshll.u32 %v1145_v45, 16  ;;  %v5459_v34 = vshll.u32 %v1131_v54, 16  ;;  %v5462_v49 = vsub.s32 %v2462_v15, %v5402_v20  ;;  %v1159_v58 = vcvt.f32.s32 %v5324_v17 }
 0x32d   : > { %vm1014_vm5 = vcmp.eq.f32.partialorder %v6612_v7, %v5387_v61  ;;  %v5466_v7 = vshll.u32 %v907_v30, 16  ;;  %v1201_v26 = vcvt.f32.s32 %v5330_v39  ;;  %v935_v14 = vcvt.f32.s32 %v5332_v6 }
 0x32e   : > { %v1015_v33 = vsel %vm1014_vm5, %v1010_v25, inf  ;;  %v5464_v25 = vshll.u32 %v921_v57, 16  ;;  %v1187_v22 = vcvt.f32.s32 %v5342_v38  ;;  %v5474_v23 = vshll.u32 %v1173_v35, 16 }
 0x32f   : > { %1016 = vmin.xlane.f32.xlu0 %v1015_v33  ;;  %v949_v33 = vcvt.f32.s32 %v5317_v4  ;;  %v1229_v28 = vcvt.f32.s32 %v5350_v10  ;;  %v963_v59 = vcvt.f32.s32 %v5352_v56  ;;  %v1005_v52 = vcvt.f32.s32 %v5360_v12 }
 0x330   : > { %v1215_v4 = vcvt.f32.s32 %v5362_v36  ;;  %v1257_v17 = vcvt.f32.s32 %v5370_v46  ;;  %v991_v39 = vcvt.f32.s32 %v5372_v48  ;;  %v1033_v6 = vcvt.f32.s32 %v5379_v51 }
 0x331   : > { %v5483_v43 = vshll.u32 %v949_v33, 16  ;;  %v5485_v38 = vshll.u32 %v1159_v58, 16  ;;  %v1243_v19 = vcvt.f32.s32 %v5381_v47  ;;  %v5488_v42 = vshll.u32 %v1201_v26, 16  ;;  %v6615_v58 = vld [vmem:[#allocation3_spill] sm:$0xff] }
 0x332   : > { %v5490_v56 = vshll.u32 %v935_v14, 16  ;;  %v5492_v12 = vshll.u32 %v977_v11, 16  ;;  %v5494_v36 = vshll.u32 %v1187_v22, 16  ;;  %v5496_v46 = vshll.u32 %v1229_v28, 16 }
 0x333   : > { %v5498_v48 = vshll.u32 %v963_v59, 16  ;;  %v5500_v51 = vshll.u32 %v1005_v52, 16  ;;  %v5504_v29 = vshll.u32 %v1215_v4, 16  ;;  %v5506_v47 = vshll.u32 %v1257_v17, 16 }
 0x334   : > { %v5508_v62 = vshll.u32 %v991_v39, 16  ;;  %v5510_v45 = vshll.u32 %v1033_v6, 16  ;;  %v5512_v57 = vshll.u32 %v1243_v19, 16 }
 0x360   : > { %v1059_v32 = vpop.xlane.xlu1 %1058 }
 0x361   : > { %v1060_v10 = vcvt.f32.s32 %v1059_v32 }
 0x363   : > { %v5502_v50 = vadd.s32 %v1062_v16, %v1060_v10 }
 0x364   : > { %v835_v54 = vpop.xlane.xlu1 %834  ;;  %v1045_v15 = vpop.xlane.xlu0 %1044 }
 0x365   : > { %v836_v30 = vcvt.f32.s32 %v835_v54  ;;  %v1046_v35 = vcvt.f32.s32 %v1045_v15  ;;  %v1979_v33 = vrot.slane %v5502_v50, %v5427_v0  ;;  %vm1277_vm6 = vcmp.eq.s32.totalorder %v5502_v50, %v6615_v58 }
 0x366   : > { %v1983_v16 = vrot.slane %v5502_v50, %v5432_v2  ;;  %v1987_v26 = vrot.slane %v5502_v50, %v5435_v1  ;;  %v1991_v14 = vrot.slane %v5502_v50, %v5438_v18 }
 0x367   : > { %v839_v11 = vadd.s32 %v5404_v40, %v836_v30  ;;  %v5526_v22 = vadd.s32 %v5414_v53, %v1046_v35 }
 0x368   : > { %v1087_v52 = vpop.xlane.xlu1 %1086  ;;  %v821_v4 = vpop.xlane.xlu0 %820  ;;  %v5536_v6 = vcombine.low %v1979_v33, %v1983_v16  ;;  %v5538_v40 = vcombine.low %v1987_v26, %v1991_v14  ;;  %v6575_v33 = vmov 1.0|1.0  }
 0x369   : > { %v1088_v53 = vcvt.f32.s32 %v1087_v52  ;;  %v822_v32 = vcvt.f32.s32 %v821_v4  ;;  %vm1276_vm7 = vcmp.eq.s32.totalorder %v5526_v22, %v6615_v58  ;;  %vm1261_vm8 = vcmp.eq.s32.totalorder %v839_v11, %v6615_v58 }
 0x36a   : > { %vm4682_vm9 = vmpackc.low %vm1277_vm6, %vm1276_vm7  ;;  %v1467_v19 = vrot.slane %v839_v11, %v5427_v0  ;;  %v1471_v10 = vrot.slane %v839_v11, %v5432_v2  ;;  %v1475_v54 = vrot.slane %v839_v11, %v5435_v1  ;;  %v1479_v15 = vrot.slane %v839_v11, %v5438_v18 }
 0x36b   : > { %v5551_v30 = vadd.s32 %v5416_v21, %v1088_v53  ;;  %v825_v35 = vadd.s32 %v5406_v5, %v822_v32  ;;  %4683 = vmatprep.subr.msk.bf16.mxu1 %vm4682_vm9, %v6575_v33  ;;  %v1483_v16 = vrot.slane %v839_v11, %v5441_v24  ;;  %v1487_v26 = vrot.slane %v839_v11, %v5444_v3 }
 0x36c   : > { %v863_v14 = vpop.xlane.xlu1 %862  ;;  %v1073_v52 = vpop.xlane.xlu0 %1072  ;;  %v1491_v4 = vrot.slane %v839_v11, %v5447_v8  ;;  %v1495_v17 = vrot.slane %v839_v11, %v5455_v37  ;;  %v2505_v39 = vcombine.low %v1467_v19, %v1471_v10  ;;  %v2506_v28 = vcombine.low %v1475_v54, %v1479_v15 }
 0x36d   : > { %v864_v59 = vcvt.f32.s32 %v863_v14  ;;  %v1074_v21 = vcvt.f32.s32 %v1073_v52  ;;  %vm1260_vm10 = vcmp.eq.s32.totalorder %v825_v35, %v6615_v58  ;;  %vm1279_vm11 = vcmp.eq.s32.totalorder %v5551_v30, %v6615_v58 }
 0x36e   : > { %vm4684_vm12 = vmpackc.low %vm1261_vm8, %vm1260_vm10  ;;  %v2507_v5 = vcombine.low %v1483_v16, %v1487_v26  ;;  %v2508_v53 = vcombine.low %v1491_v4, %v1495_v17  ;;  %v2515_v32 = vrot.slane %v2505_v39, %v5462_v49  ;;  %v2522_v33 = vrot.slane %v2506_v28, %v5462_v49 }
 0x36f   : > { %v5567_v44 = vadd.s32 %v5408_v63, %v864_v59  ;;  %v5570_v19 = vadd.s32 %v5418_v27, %v1074_v21  ;;  %v6616_v10 = vmov 1.0|1.0   ;;  %v1435_v54 = vrot.slane %v825_v35, %v5427_v0 }
 0x370   : > { %4685 = vmatpush3.bf16.xpose.msk.msra.mxu1 %vm4684_vm12, %v6616_v10  ;;  %v1439_v15 = vrot.slane %v825_v35, %v5432_v2  ;;  %v1115_v11 = vpop.xlane.xlu1 %1114  ;;  %v849_v14 = vpop.xlane.xlu0 %848  ;;  %v2529_v17 = vrot.slane %v2507_v5, %v5462_v49  ;;  %v2536_v39 = vrot.slane %v2508_v53, %v5462_v49  ;;  %v2537_v16 = vcombine.low %v2515_v32, %v2522_v33 }
 0x371   : > { %v1443_v28 = vrot.slane %v825_v35, %v5435_v1  ;;  %v1116_v63 = vcvt.f32.s32 %v1115_v11  ;;  %v850_v59 = vcvt.f32.s32 %v849_v14  ;;  %vm1278_vm13 = vcmp.eq.s32.totalorder %v5570_v19, %v6615_v58 }
 0x372   : > { %vm1263_vm14 = vcmp.eq.s32.totalorder %v5567_v44, %v6615_v58  ;;  %vm4686_vm15 = vmpackc.low %vm1279_vm11, %vm1278_vm13  ;;  %v2538_v27 = vcombine.low %v2529_v17, %v2536_v39  ;;  %v2545_v26 = vrot.slane %v2537_v16, %v5462_v49  ;;  %v1447_v52 = vrot.slane %v825_v35, %v5438_v18 }
 0x373   : > { %v1451_v33 = vrot.slane %v825_v35, %v5441_v24  ;;  %v5589_v4 = vadd.s32 %v5420_v41, %v1116_v63  ;;  %v5592_v21 = vadd.s32 %v5410_v60, %v850_v59  ;;  %4687 = vmatprep.subr.msk.bf16.mxu1 %vm4686_vm15, %v6616_v10  ;;  %v1455_v5 = vrot.slane %v825_v35, %v5444_v3 }
 0x374   : > { %v1459_v53 = vrot.slane %v825_v35, %v5447_v8  ;;  %v1101_v32 = vpop.xlane.xlu0 %1100  ;;  %v2552_v11 = vrot.slane %v2538_v27, %v5462_v49  ;;  %v1463_v14 = vrot.slane %v825_v35, %v5455_v37  ;;  %v2456_v17 = vcombine.low %v1435_v54, %v1439_v15 }
 0x375   : > { %6617 = vst [vmem:[#allocation5_spill] sm:$0xff] %v5589_v4  ;;  %v2457_v39 = vcombine.low %v1443_v28, %v1447_v52  ;;  %v1102_v16 = vcvt.f32.s32 %v1101_v32  ;;  %vm1262_vm1 = vcmp.eq.s32.totalorder %v5592_v21, %v6615_v58  ;;  %v2458_v41 = vcombine.low %v1451_v33, %v1455_v5 }
 0x376   : > { %vm1281_vm2 = vcmp.eq.s32.totalorder %v5589_v4, %v6615_v58  ;;  %v2553_v60 = vcombine.low %v2545_v26, %v2552_v11  ;;  %vm4688_vm3 = vmpackc.low %vm1263_vm14, %vm1262_vm1  ;;  %v2459_v63 = vcombine.low %v1459_v53, %v1463_v14  ;;  %v2466_v59 = vrot.slane %v2456_v17, %v5462_v49 }
 0x377   : > { %v2473_v35 = vrot.slane %v2457_v39, %v5462_v49  ;;  %v5609_v54 = vadd.s32 %v5449_v55, %v1102_v16  ;;  %v2480_v15 = vrot.slane %v2458_v41, %v5462_v49  ;;  %v1531_v28 = vrot.slane %v5567_v44, %v5427_v0 }
 0x378   : > { %4689 = vmatpush3.bf16.xpose.msk.msra.mxu1 %vm4688_vm3, %v6616_v10  ;;  %v1535_v27 = vrot.slane %v5567_v44, %v5432_v2  ;;  %4028 = vperm.xlu1 %4728, %v2553_v60   ;;  %v891_v26 = vpop.xlane.xlu1 %890  ;;  %v877_v52 = vpop.xlane.xlu0 %876  ;;  %v2487_v33 = vrot.slane %v2459_v63, %v5462_v49  ;;  %v1539_v55 = vrot.slane %v5567_v44, %v5435_v1 }
 0x379   : > { %6618 = vst [vmem:[#allocation6_spill] sm:$0xff] %v5609_v54  ;;  %v2488_v5 = vcombine.low %v2466_v59, %v2473_v35  ;;  %v1543_v53 = vrot.slane %v5567_v44, %v5438_v18  ;;  %v892_v32 = vcvt.f32.s32 %v891_v26  ;;  %v878_v11 = vcvt.f32.s32 %v877_v52 }
 0x37a   : > { %vm1280_vm4 = vcmp.eq.s32.totalorder %v5609_v54, %v6615_v58  ;;  %v1547_v14 = vrot.slane %v5567_v44, %v5441_v24  ;;  %v2489_v17 = vcombine.low %v2480_v15, %v2487_v33  ;;  %v1551_v16 = vrot.slane %v5567_v44, %v5444_v3 }
 0x37b   : > { %v2496_v39 = vrot.slane %v2488_v5, %v5462_v49  ;;  %vm4690_vm5 = vmpackc.low %vm1281_vm2, %vm1280_vm4  ;;  %v1555_v41 = vrot.slane %v5567_v44, %v5447_v8  ;;  %v5635_v60 = vadd.s32 %v5451_v13, %v892_v32  ;;  %v5638_v63 = vadd.s32 %v5412_v9, %v878_v11 }
 0x37c   : > { %4691 = vmatprep.subr.msk.bf16.mxu1 %vm4690_vm5, %v6616_v10  ;;  %v1559_v59 = vrot.slane %v5567_v44, %v5455_v37  ;;  %v2603_v35 = vcombine.low %v1531_v28, %v1535_v27  ;;  %v2503_v15 = vrot.slane %v2489_v17, %v5462_v49  ;;  %v1143_v26 = vpop.xlane.xlu1 %1142  ;;  %v1129_v52 = vpop.xlane.xlu0 %1128  ;;  %v2604_v33 = vcombine.low %v1539_v55, %v1543_v53 }
 0x37d   : > { %v2605_v5 = vcombine.low %v1547_v14, %v1551_v16  ;;  %v1499_v20 = vrot.slane %v5592_v21, %v5427_v0  ;;  %v1144_v13 = vcvt.f32.s32 %v1143_v26  ;;  %v1130_v32 = vcvt.f32.s32 %v1129_v52 }
 0x37e   : > { %v2606_v54 = vcombine.low %v1555_v41, %v1559_v59  ;;  %v2613_v9 = vrot.slane %v2603_v35, %v5462_v49  ;;  %v2504_v11 = vcombine.low %v2496_v39, %v2503_v15  ;;  %v2620_v4 = vrot.slane %v2604_v33, %v5462_v49 }
 0x37f   : > { %v2627_v44 = vrot.slane %v2605_v5, %v5462_v49  ;;  %vm1264_vm6 = vcmp.eq.s32.totalorder %v5638_v63, %v6615_v58  ;;  %v5652_v28 = vadd.s32 %v5457_v31, %v1144_v13  ;;  %v5655_v27 = vadd.s32 %v5459_v34, %v1130_v32 }
 0x380   : > { %v2634_v55 = vrot.slane %v2606_v54, %v5462_v49  ;;  %vm1265_vm7 = vcmp.eq.s32.totalorder %v5635_v60, %v6615_v58  ;;  %4025 = vperm.xlu0 %4729, %v2504_v11   ;;  %v2635_v53 = vcombine.low %v2613_v9, %v2620_v4  ;;  %v919_v14 = vpop.xlane.xlu1 %918  ;;  %v905_v17 = vpop.xlane.xlu0 %904  ;;  %v1503_v39 = vrot.slane %v5592_v21, %v5432_v2 }
 0x381   : > { %vm4692_vm8 = vmpackc.low %vm1265_vm7, %vm1264_vm6  ;;  %v1507_v31 = vrot.slane %v5592_v21, %v5435_v1  ;;  %v1511_v34 = vrot.slane %v5592_v21, %v5438_v18  ;;  %v920_v54 = vcvt.f32.s32 %v919_v14  ;;  %v906_v41 = vcvt.f32.s32 %v905_v17 }
 0x382   : > { %v2636_v16 = vcombine.low %v2627_v44, %v2634_v55  ;;  %4693 = vmatpush3.bf16.xpose.msk.msra.mxu1 %vm4692_vm8, %v6616_v10  ;;  %v1515_v4 = vrot.slane %v5592_v21, %v5441_v24  ;;  %v2643_v59 = vrot.slane %v2635_v53, %v5462_v49  ;;  %v1519_v35 = vrot.slane %v5592_v21, %v5444_v3 }
 0x383   : > { %v1523_v15 = vrot.slane %v5592_v21, %v5447_v8  ;;  %v1527_v26 = vrot.slane %v5592_v21, %v5455_v37  ;;  %v5678_v33 = vadd.s32 %v5464_v25, %v920_v54  ;;  %v5681_v5 = vadd.s32 %v5466_v7, %v906_v41 }
 0x384   : > { %v2650_v52 = vrot.slane %v2636_v16, %v5462_v49  ;;  %v2554_v13 = vcombine.low %v1499_v20, %v1503_v39  ;;  %v2555_v32 = vcombine.low %v1507_v31, %v1511_v34  ;;  %v2556_v9 = vcombine.low %v1515_v4, %v1519_v35  ;;  %v1171_v44 = vpop.xlane.xlu1 %1170 }
 0x385   : > { %v2557_v11 = vcombine.low %v1523_v15, %v1527_v26  ;;  %vm1282_vm9 = vcmp.eq.s32.totalorder %v5655_v27, %v6615_v58  ;;  %vm1283_vm10 = vcmp.eq.s32.totalorder %v5652_v28, %v6615_v58  ;;  %v1172_v21 = vcvt.f32.s32 %v1171_v44 }
 0x386   : > { %v2651_v55 = vcombine.low %v2643_v59, %v2650_v52  ;;  %v2564_v53 = vrot.slane %v2554_v13, %v5462_v49  ;;  %v2571_v25 = vrot.slane %v2555_v32, %v5462_v49  ;;  %v2578_v7 = vrot.slane %v2556_v9, %v5462_v49  ;;  %vm4694_vm11 = vmpackc.low %vm1283_vm10, %vm1282_vm9 }
 0x387   : > { %v2585_v20 = vrot.slane %v2557_v11, %v5462_v49  ;;  %v6619_v14 = vrot.slane %v5502_v50, %v5444_v3  ;;  %v6620_v17 = vrot.slane %v5502_v50, %v5441_v24  ;;  %v1019_v31 = vcvt.f32.s32 %v5387_v61  ;;  %4695 = vmatprep.subr.msk.bf16.mxu1 %vm4694_vm11, %v6616_v10 }
 0x388   : > { %4034 = vperm.xlu0 %4729, %v2651_v55   ;;  %v5700_v34 = vadd.s32 %v5474_v23, %v1172_v21  ;;  %v6621_v16 = vrot.slane %v5502_v50, %v5455_v37  ;;  %v6622_v54 = vrot.slane %v5502_v50, %v5447_v8  ;;  %v3299_v4 = vrot.slane %v5536_v6, %v5462_v49  ;;  %v947_v52 = vpop.xlane.xlu1 %946 }
 0x389   : > { %v3291_v39 = vcombine.low %v6620_v17, %v6619_v14  ;;  %v2586_v59 = vcombine.low %v2564_v53, %v2571_v25  ;;  %v2587_v35 = vcombine.low %v2578_v7, %v2585_v20  ;;  %v3306_v15 = vrot.slane %v5538_v40, %v5462_v49 }
 0x38a   : > { %v3292_v41 = vcombine.low %v6622_v54, %v6621_v16  ;;  %vm1266_vm12 = vcmp.eq.s32.totalorder %v5681_v5, %v6615_v58  ;;  %vm1267_vm13 = vcmp.eq.s32.totalorder %v5678_v33, %v6615_v58  ;;  %v948_v50 = vcvt.f32.s32 %v947_v52 }
 0x38b   : > { %v3313_v26 = vrot.slane %v3291_v39, %v5462_v49  ;;  %v2594_v13 = vrot.slane %v2586_v59, %v5462_v49  ;;  %v2601_v6 = vrot.slane %v2587_v35, %v5462_v49  ;;  %v3321_v32 = vcombine.low %v3299_v4, %v3306_v15  ;;  %vm4696_vm14 = vmpackc.low %vm1267_vm13, %vm1266_vm12 }
 0x38c   : > { %v3320_v23 = vrot.slane %v3292_v41, %v5462_v49  ;;  %v1595_v40 = vrot.slane %v5635_v60, %v5427_v0  ;;  %4697 = vmatpush3.bf16.xpose.msk.msra.mxu1 %vm4696_vm14, %v6616_v10  ;;  %v5724_v11 = vadd.s32 %v5483_v43, %v948_v50  ;;  %v1599_v44 = vrot.slane %v5635_v60, %v5432_v2 }
 0x38d   : > { %v1603_v55 = vrot.slane %v5635_v60, %v5435_v1  ;;  %v2602_v53 = vcombine.low %v2594_v13, %v2601_v6  ;;  %v3329_v21 = vrot.slane %v3321_v32, %v5462_v49  ;;  %v1607_v25 = vrot.slane %v5635_v60, %v5438_v18 }
 0x38e   : > { %v3322_v9 = vcombine.low %v3313_v26, %v3320_v23  ;;  %v1611_v7 = vrot.slane %v5635_v60, %v5441_v24  ;;  %v1615_v43 = vrot.slane %v5635_v60, %v5444_v3  ;;  %v1619_v14 = vrot.slane %v5635_v60, %v5447_v8 }
 0x38f   : > { %v1623_v17 = vrot.slane %v5635_v60, %v5455_v37  ;;  %4031 = vperm.xlu1 %4728, %v2602_v53   ;;  %v2701_v39 = vcombine.low %v1595_v40, %v1599_v44  ;;  %v2702_v16 = vcombine.low %v1603_v55, %v1607_v25  ;;  %v2171_v54 = vrot.slane %v5652_v28, %v5427_v0 }
 0x390   : > { %v3336_v20 = vrot.slane %v3322_v9, %v5462_v49  ;;  %v2175_v41 = vrot.slane %v5652_v28, %v5432_v2  ;;  %v2703_v59 = vcombine.low %v1611_v7, %v1615_v43  ;;  %v2179_v15 = vrot.slane %v5652_v28, %v5435_v1 }
 0x391   : > { %v2704_v35 = vcombine.low %v1619_v14, %v1623_v17  ;;  %v2711_v26 = vrot.slane %v2701_v39, %v5462_v49  ;;  %v2718_v52 = vrot.slane %v2702_v16, %v5462_v49  ;;  %v2183_v60 = vrot.slane %v5652_v28, %v5438_v18 }
 0x392   : > { %v3337_v4 = vcombine.low %v3329_v21, %v3336_v20  ;;  %v2187_v23 = vrot.slane %v5652_v28, %v5441_v24  ;;  %v2725_v50 = vrot.slane %v2703_v59, %v5462_v49  ;;  %v2191_v6 = vrot.slane %v5652_v28, %v5444_v3 }
 0x393   : > { %v2732_v13 = vrot.slane %v2704_v35, %v5462_v49  ;;  %v2195_v32 = vrot.slane %v5652_v28, %v5447_v8  ;;  %v2733_v40 = vcombine.low %v2711_v26, %v2718_v52  ;;  %v2199_v9 = vrot.slane %v5652_v28, %v5455_v37 }
 0x394   : > { %4076 = vperm.xlu1 %4728, %v3337_v4   ;;  %v3583_v44 = vcombine.low %v2171_v54, %v2175_v41  ;;  %v3584_v55 = vcombine.low %v2179_v15, %v2183_v60  ;;  %v3585_v21 = vcombine.low %v2187_v23, %v2191_v6  ;;  %v1563_v25 = vrot.slane %v5638_v63, %v5427_v0 }
 0x395   : > { %v2734_v53 = vcombine.low %v2725_v50, %v2732_v13  ;;  %v1567_v7 = vrot.slane %v5638_v63, %v5432_v2  ;;  %v2741_v20 = vrot.slane %v2733_v40, %v5462_v49  ;;  %v3586_v43 = vcombine.low %v2195_v32, %v2199_v9 }
 0x396   : > { %v3593_v14 = vrot.slane %v3583_v44, %v5462_v49  ;;  %v3600_v17 = vrot.slane %v3584_v55, %v5462_v49  ;;  %v3607_v28 = vrot.slane %v3585_v21, %v5462_v49  ;;  %v1571_v16 = vrot.slane %v5638_v63, %v5435_v1 }
 0x397   : > { %v2748_v39 = vrot.slane %v2734_v53, %v5462_v49  ;;  %v1575_v54 = vrot.slane %v5638_v63, %v5438_v18  ;;  %v3614_v41 = vrot.slane %v3586_v43, %v5462_v49  ;;  %v1579_v59 = vrot.slane %v5638_v63, %v5441_v24 }
 0x398   : > { %v3615_v4 = vcombine.low %v3593_v14, %v3600_v17  ;;  %v1583_v35 = vrot.slane %v5638_v63, %v5444_v3  ;;  %v1587_v26 = vrot.slane %v5638_v63, %v5447_v8  ;;  %v1591_v52 = vrot.slane %v5638_v63, %v5455_v37 }
 0x399   : > { %v2749_v15 = vcombine.low %v2741_v20, %v2748_v39  ;;  %v2652_v60 = vcombine.low %v1563_v25, %v1567_v7  ;;  %v3616_v23 = vcombine.low %v3607_v28, %v3614_v41  ;;  %v2653_v13 = vcombine.low %v1571_v16, %v1575_v54 }
 0x39a   : > { %v3623_v50 = vrot.slane %v3615_v4, %v5462_v49  ;;  %v2654_v6 = vcombine.low %v1579_v59, %v1583_v35  ;;  %v2655_v32 = vcombine.low %v1587_v26, %v1591_v52  ;;  %v1659_v9 = vrot.slane %v5678_v33, %v5427_v0 }
 0x39b   : > { %4040 = vperm.xlu0 %4729, %v2749_v15   ;;  %v2662_v40 = vrot.slane %v2652_v60, %v5462_v49  ;;  %v1663_v44 = vrot.slane %v5678_v33, %v5432_v2  ;;  %v3630_v55 = vrot.slane %v3616_v23, %v5462_v49  ;;  %v2669_v63 = vrot.slane %v2653_v13, %v5462_v49 }
 0x39c   : > { %v2676_v53 = vrot.slane %v2654_v6, %v5462_v49  ;;  %v1667_v21 = vrot.slane %v5678_v33, %v5435_v1  ;;  %v2683_v25 = vrot.slane %v2655_v32, %v5462_v49  ;;  %v1671_v7 = vrot.slane %v5678_v33, %v5438_v18 }
 0x39d   : > { %v1675_v20 = vrot.slane %v5678_v33, %v5441_v24  ;;  %v1679_v43 = vrot.slane %v5678_v33, %v5444_v3  ;;  %v3631_v14 = vcombine.low %v3623_v50, %v3630_v55  ;;  %v2684_v17 = vcombine.low %v2662_v40, %v2669_v63 }
 0x39e   : > { %v1683_v39 = vrot.slane %v5678_v33, %v5447_v8  ;;  %v1687_v28 = vrot.slane %v5678_v33, %v5455_v37  ;;  %v2685_v16 = vcombine.low %v2676_v53, %v2683_v25  ;;  %v2799_v54 = vcombine.low %v1659_v9, %v1663_v44 }
 0x39f   : > { %v2800_v41 = vcombine.low %v1667_v21, %v1671_v7  ;;  %v2801_v4 = vcombine.low %v1675_v20, %v1679_v43  ;;  %4094 = vperm.xlu1 %4728, %v3631_v14   ;;  %v2692_v59 = vrot.slane %v2684_v17, %v5462_v49  ;;  %v2139_v15 = vrot.slane %v5655_v27, %v5427_v0 }
 0x3a0   : > { %v2802_v35 = vcombine.low %v1683_v39, %v1687_v28  ;;  %v2143_v26 = vrot.slane %v5655_v27, %v5432_v2  ;;  %v2699_v52 = vrot.slane %v2685_v16, %v5462_v49  ;;  %v2809_v60 = vrot.slane %v2799_v54, %v5462_v49  ;;  %v1157_v40 = vpop.xlane.xlu0 %1156 }
 0x3a1   : > { %v2816_v33 = vrot.slane %v2800_v41, %v5462_v49  ;;  %v2823_v23 = vrot.slane %v2801_v4, %v5462_v49  ;;  %v2147_v13 = vrot.slane %v5655_v27, %v5435_v1  ;;  %v2151_v6 = vrot.slane %v5655_v27, %v5438_v18 }
 0x3a2   : > { %v2830_v50 = vrot.slane %v2802_v35, %v5462_v49  ;;  %v2155_v32 = vrot.slane %v5655_v27, %v5441_v24  ;;  %v2700_v9 = vcombine.low %v2692_v59, %v2699_v52  ;;  %v2159_v55 = vrot.slane %v5655_v27, %v5444_v3 }
 0x3a3   : > { %v2831_v44 = vcombine.low %v2809_v60, %v2816_v33  ;;  %v2163_v63 = vrot.slane %v5655_v27, %v5447_v8  ;;  %v2167_v21 = vrot.slane %v5655_v27, %v5455_v37  ;;  %v3534_v25 = vcombine.low %v2139_v15, %v2143_v26 }
 0x3a4   : > { %v2832_v53 = vcombine.low %v2823_v23, %v2830_v50  ;;  %v3535_v7 = vcombine.low %v2147_v13, %v2151_v6  ;;  %4037 = vperm.xlu0 %4729, %v2700_v9   ;;  %v3536_v43 = vcombine.low %v2155_v32, %v2159_v55  ;;  %v1627_v14 = vrot.slane %v5681_v5, %v5427_v0  ;;  %v1199_v27 = vpop.xlane.xlu1 %1198  ;;  %v933_v41 = vpop.xlane.xlu0 %932 }
 0x3a5   : > { %v2839_v20 = vrot.slane %v2831_v44, %v5462_v49  ;;  %v1631_v17 = vrot.slane %v5681_v5, %v5432_v2  ;;  %v3537_v28 = vcombine.low %v2163_v63, %v2167_v21  ;;  %v3544_v16 = vrot.slane %v3534_v25, %v5462_v49 }
 0x3a6   : > { %v2846_v39 = vrot.slane %v2832_v53, %v5462_v49  ;;  %v3551_v54 = vrot.slane %v3535_v7, %v5462_v49  ;;  %v3558_v4 = vrot.slane %v3536_v43, %v5462_v49  ;;  %v1635_v59 = vrot.slane %v5681_v5, %v5435_v1 }
 0x3a7   : > { %v1639_v35 = vrot.slane %v5681_v5, %v5438_v18  ;;  %v1643_v15 = vrot.slane %v5681_v5, %v5441_v24  ;;  %v3565_v52 = vrot.slane %v3537_v28, %v5462_v49  ;;  %v1647_v33 = vrot.slane %v5681_v5, %v5444_v3 }
 0x3a8   : > { %v2847_v26 = vcombine.low %v2839_v20, %v2846_v39  ;;  %v3566_v60 = vcombine.low %v3544_v16, %v3551_v54  ;;  %v1651_v23 = vrot.slane %v5681_v5, %v5447_v8  ;;  %v1655_v50 = vrot.slane %v5681_v5, %v5455_v37  ;;  %v975_v63 = vpop.xlane.xlu1 %974  ;;  %v1185_v53 = vpop.xlane.xlu0 %1184 }
 0x3a9   : > { %v2750_v13 = vcombine.low %v1627_v14, %v1631_v17  ;;  %v2751_v6 = vcombine.low %v1635_v59, %v1639_v35  ;;  %v3567_v32 = vcombine.low %v3558_v4, %v3565_v52  ;;  %v2752_v44 = vcombine.low %v1643_v15, %v1647_v33 }
 0x3aa   : > { %4046 = vperm.xlu0 %4729, %v2847_v26   ;;  %v3574_v9 = vrot.slane %v3566_v60, %v5462_v49  ;;  %v1158_v55 = vcvt.f32.s32 %v1157_v40  ;;  %v2753_v21 = vcombine.low %v1651_v23, %v1655_v50  ;;  %v1200_v20 = vcvt.f32.s32 %v1199_v27 }
 0x3ab   : > { %v2760_v25 = vrot.slane %v2750_v13, %v5462_v49  ;;  %v2767_v7 = vrot.slane %v2751_v6, %v5462_v49  ;;  %v3581_v43 = vrot.slane %v3567_v32, %v5462_v49  ;;  %v2774_v5 = vrot.slane %v2752_v44, %v5462_v49 }
 0x3ac   : > { %v5856_v14 = vadd.s32 %v5485_v38, %v1158_v55  ;;  %v934_v17 = vcvt.f32.s32 %v933_v41  ;;  %v2781_v39 = vrot.slane %v2753_v21, %v5462_v49  ;;  %v5860_v40 = vadd.s32 %v5488_v42, %v1200_v20  ;;  %v1227_v4 = vpop.xlane.xlu1 %1226  ;;  %v961_v38 = vpop.xlane.xlu0 %960 }
 0x3ad   : > { %v2782_v28 = vcombine.low %v2760_v25, %v2767_v7  ;;  %vm1285_vm15 = vcmp.eq.s32.totalorder %v5700_v34, %v6615_v58  ;;  %v3582_v16 = vcombine.low %v3574_v9, %v3581_v43  ;;  %v976_v27 = vcvt.f32.s32 %v975_v63 }
 0x3ae   : > { %v937_v54 = vadd.s32 %v5490_v56, %v934_v17  ;;  %vm1284_vm1 = vcmp.eq.s32.totalorder %v5856_v14, %v6615_v58  ;;  %v2783_v59 = vcombine.low %v2774_v5, %v2781_v39  ;;  %v1186_v35 = vcvt.f32.s32 %v1185_v53 }
 0x3af   : > { %v2790_v41 = vrot.slane %v2782_v28, %v5462_v49  ;;  %vm4698_vm2 = vmpackc.low %vm1285_vm15, %vm1284_vm1  ;;  %vm1269_vm3 = vcmp.eq.s32.totalorder %v5724_v11, %v6615_v58  ;;  %4091 = vperm.xlu1 %4728, %v3582_v16   ;;  %v5872_v42 = vadd.s32 %v5492_v12, %v976_v27  ;;  %v1228_v56 = vcvt.f32.s32 %v1227_v4 }
 0x3b0   : > { %4699 = vmatprep.subr.msk.bf16.mxu1 %vm4698_vm2, %v6616_v10  ;;  %vm1268_vm4 = vcmp.eq.s32.totalorder %v937_v54, %v6615_v58  ;;  %v962_v15 = vcvt.f32.s32 %v961_v38  ;;  %v2797_v26 = vrot.slane %v2783_v59, %v5462_v49  ;;  %v5877_v52 = vadd.s32 %v5494_v36, %v1186_v35  ;;  %v1003_v23 = vpop.xlane.xlu1 %1002  ;;  %v1213_v50 = vpop.xlane.xlu0 %1212 }
 0x3b1   : > { %vm4700_vm5 = vmpackc.low %vm1269_vm3, %vm1268_vm4  ;;  %vm1287_vm6 = vcmp.eq.s32.totalorder %v5860_v40, %v6615_v58  ;;  %v1691_v60 = vrot.slane %v937_v54, %v5427_v0  ;;  %v5884_v12 = vadd.s32 %v5496_v46, %v1228_v56  ;;  %vm1271_vm7 = vcmp.eq.s32.totalorder %v5872_v42, %v6615_v58 }
 0x3b2   : > { %4701 = vmatpush3.bf16.xpose.msk.msra.mxu1 %vm4700_vm5, %v6616_v10  ;;  %v5887_v33 = vadd.s32 %v5498_v48, %v962_v15  ;;  %v1695_v36 = vrot.slane %v937_v54, %v5432_v2  ;;  %v2798_v13 = vcombine.low %v2790_v41, %v2797_v26  ;;  %vm1286_vm8 = vcmp.eq.s32.totalorder %v5877_v52, %v6615_v58 }
 0x3b3   : > { %v1004_v6 = vcvt.f32.s32 %v1003_v23  ;;  %v1214_v32 = vcvt.f32.s32 %v1213_v50  ;;  %vm4702_vm9 = vmpackc.low %vm1287_vm6, %vm1286_vm8  ;;  %v1699_v46 = vrot.slane %v937_v54, %v5435_v1  ;;  %v1703_v48 = vrot.slane %v937_v54, %v5438_v18 }
 0x3b4   : > { %vm1270_vm10 = vcmp.eq.s32.totalorder %v5887_v33, %v6615_v58  ;;  %v1707_v9 = vrot.slane %v937_v54, %v5441_v24  ;;  %v1020_v44 = vshll.u32 %v1019_v31, 16  ;;  %4043 = vperm.xlu0 %4729, %v2798_v13   ;;  %4703 = vmatprep.subr.msk.bf16.mxu1 %vm4702_vm9, %v6616_v10  ;;  %v1711_v21 = vrot.slane %v937_v54, %v5444_v3  ;;  %v1255_v61 = vpop.xlane.xlu1 %1254  ;;  %v989_v31 = vpop.xlane.xlu0 %988 }
 0x3b5   : > { %v5903_v55 = vadd.s32 %v5500_v51, %v1004_v6  ;;  %v5906_v63 = vadd.s32 %v5504_v29, %v1214_v32  ;;  %vm5911_vm11 = vmpackc.low %vm1271_vm7, %vm1270_vm10  ;;  %v1715_v25 = vrot.slane %v937_v54, %v5447_v8  ;;  %v1719_v7 = vrot.slane %v937_v54, %v5455_v37 }
 0x3b6   : > { %v2848_v51 = vcombine.low %v1691_v60, %v1695_v36  ;;  %v2849_v20 = vcombine.low %v1699_v46, %v1703_v48  ;;  %v1256_v43 = vcvt.f32.s32 %v1255_v61  ;;  %v990_v29 = vcvt.f32.s32 %v989_v31 }
 0x3b7   : > { %v2850_v5 = vcombine.low %v1707_v9, %v1711_v21  ;;  %vm1288_vm12 = vcmp.eq.s32.totalorder %v5906_v63, %v6615_v58  ;;  %v2851_v17 = vcombine.low %v1715_v25, %v1719_v7  ;;  %vm1289_vm13 = vcmp.eq.s32.totalorder %v5884_v12, %v6615_v58 }
 0x3b8   : > { %v2858_v39 = vrot.slane %v2848_v51, %v5462_v49  ;;  %v2865_v28 = vrot.slane %v2849_v20, %v5462_v49  ;;  %v5925_v16 = vadd.s32 %v5506_v47, %v1256_v43  ;;  %v5928_v54 = vadd.s32 %v5508_v62, %v990_v29  ;;  %vm4706_vm14 = vmpackc.low %vm1289_vm13, %vm1288_vm12  ;;  %v1031_v41 = vpop.xlane.xlu1 %1030  ;;  %v1241_v35 = vpop.xlane.xlu0 %1240 }
 0x3b9   : > { %v2872_v27 = vrot.slane %v2850_v5, %v5462_v49  ;;  %v1947_v4 = vrot.slane %v5526_v22, %v5427_v0  ;;  %v2879_v38 = vrot.slane %v2851_v17, %v5462_v49  ;;  %v1951_v47 = vrot.slane %v5526_v22, %v5432_v2 }
 0x3ba   : > { %4705 = vmatpush3.bf16.xpose.msk.msra.mxu1 %vm5911_vm11, %v6616_v10  ;;  %v2880_v59 = vcombine.low %v2858_v39, %v2865_v28  ;;  %v1955_v62 = vrot.slane %v5526_v22, %v5435_v1  ;;  %v1032_v56 = vcvt.f32.s32 %v1031_v41  ;;  %v1242_v15 = vcvt.f32.s32 %v1241_v35 }
 0x3bb   : > { %4707 = vmatprep.subr.msk.bf16.mxu1 %vm4706_vm14, %v6616_v10  ;;  %v1959_v26 = vrot.slane %v5526_v22, %v5438_v18  ;;  %v1963_v60 = vrot.slane %v5526_v22, %v5441_v24  ;;  %v2881_v23 = vcombine.low %v2872_v27, %v2879_v38  ;;  %v1967_v36 = vrot.slane %v5526_v22, %v5444_v3 }
 0x3bc   : > { %v2888_v50 = vrot.slane %v2880_v59, %v5462_v49  ;;  %v1971_v13 = vrot.slane %v5526_v22, %v5447_v8  ;;  %v5952_v6 = vadd.s32 %v5510_v45, %v1032_v56  ;;  %v5955_v32 = vadd.s32 %v5512_v57, %v1242_v15  ;;  %v1017_v61 = vpop.xlane.xlu0 %1016 }
 0x3bd   : > { %v1975_v46 = vrot.slane %v5526_v22, %v5455_v37  ;;  %v3240_v48 = vcombine.low %v1947_v4, %v1951_v47  ;;  %v2895_v9 = vrot.slane %v2881_v23, %v5462_v49  ;;  %v3241_v53 = vcombine.low %v1955_v62, %v1959_v26 }
 0x3be   : > { %v3242_v21 = vcombine.low %v1963_v60, %v1967_v36  ;;  %vm1272_vm15 = vcmp.eq.s32.totalorder %v5928_v54, %v6615_v58  ;;  %vm1273_vm1 = vcmp.eq.s32.totalorder %v5903_v55, %v6615_v58  ;;  %v1018_v45 = vcvt.f32.s32 %v1017_v61 }
 0x3bf   : > { %v3243_v31 = vcombine.low %v1971_v13, %v1975_v46  ;;  %v3250_v25 = vrot.slane %v3240_v48, %v5462_v49  ;;  %v2896_v57 = vcombine.low %v2888_v50, %v2895_v9  ;;  %v3257_v7 = vrot.slane %v3241_v53, %v5462_v49  ;;  %vm4708_vm2 = vmpackc.low %vm1273_vm1, %vm1272_vm15 }
 0x3c0   : > { %v3264_v22 = vrot.slane %v3242_v21, %v5462_v49  ;;  %v2043_v51 = vrot.slane %v5551_v30, %v5427_v0  ;;  %v5970_v43 = vadd.s32 %v1020_v44, %v1018_v45  ;;  %v2047_v29 = vrot.slane %v5551_v30, %v5432_v2 }
 0x3c1   : > { %v3271_v20 = vrot.slane %v3243_v31, %v5462_v49  ;;  %v2051_v5 = vrot.slane %v5551_v30, %v5435_v1  ;;  %4049 = vperm.xlu0 %4729, %v2896_v57   ;;  %v3272_v17 = vcombine.low %v3250_v25, %v3257_v7  ;;  %v2055_v39 = vrot.slane %v5551_v30, %v5438_v18 }
 0x3c2   : > { %4709 = vmatpush3.bf16.xpose.msk.msra.mxu1 %vm4708_vm2, %v6616_v10  ;;  %v2059_v28 = vrot.slane %v5551_v30, %v5441_v24  ;;  %v2063_v44 = vrot.slane %v5551_v30, %v5444_v3  ;;  %v2067_v4 = vrot.slane %v5551_v30, %v5447_v8  ;;  %v2071_v38 = vrot.slane %v5551_v30, %v5455_v37 }
 0x3c3   : > { %v3273_v27 = vcombine.low %v3264_v22, %v3271_v20  ;;  %v3280_v59 = vrot.slane %v3272_v17, %v5462_v49  ;;  %v3387_v41 = vcombine.low %v2043_v51, %v2047_v29  ;;  %v3388_v35 = vcombine.low %v2051_v5, %v2055_v39  ;;  %v6625_v5 = vld [vmem:[#allocation5_spill] sm:$0xff] }
 0x3c4   : > { %vm1290_vm3 = vcmp.eq.s32.totalorder %v5955_v32, %v6615_v58  ;;  %v3389_v62 = vcombine.low %v2059_v28, %v2063_v44  ;;  %v3390_v56 = vcombine.low %v2067_v4, %v2071_v38  ;;  %vm1291_vm4 = vcmp.eq.s32.totalorder %v5925_v16, %v6615_v58 }
 0x3c5   : > { %v3287_v47 = vrot.slane %v3273_v27, %v5462_v49  ;;  %v3397_v15 = vrot.slane %v3387_v41, %v5462_v49  ;;  %v3404_v26 = vrot.slane %v3388_v35, %v5462_v49  ;;  %vm4710_vm5 = vmpackc.low %vm1291_vm4, %vm1290_vm3  ;;  %v2011_v30 = vrot.slane %v5570_v19, %v5427_v0 }
 0x3c6   : > { %v2015_v60 = vrot.slane %v5570_v19, %v5432_v2  ;;  %v3411_v50 = vrot.slane %v3389_v62, %v5462_v49  ;;  %v3418_v36 = vrot.slane %v3390_v56, %v5462_v49  ;;  %4711 = vmatprep.subr.msk.bf16.mxu1 %vm4710_vm5, %v6616_v10  ;;  %v2019_v13 = vrot.slane %v5570_v19, %v5435_v1 }
 0x3c7   : > { %v3288_v23 = vcombine.low %v3280_v59, %v3287_v47  ;;  %v3419_v46 = vcombine.low %v3397_v15, %v3404_v26  ;;  %v2023_v48 = vrot.slane %v5570_v19, %v5438_v18  ;;  %v2027_v9 = vrot.slane %v5570_v19, %v5441_v24 }
 0x3c8   : > { %v2031_v53 = vrot.slane %v5570_v19, %v5444_v3  ;;  %v3420_v21 = vcombine.low %v3411_v50, %v3418_v36  ;;  %v2035_v61 = vrot.slane %v5570_v19, %v5447_v8  ;;  %v2039_v31 = vrot.slane %v5570_v19, %v5455_v37 }
 0x3c9   : > { %4073 = vperm.xlu0 %4729, %v3288_v23   ;;  %v3338_v25 = vcombine.low %v2011_v30, %v2015_v60  ;;  %v3427_v45 = vrot.slane %v3419_v46, %v5462_v49  ;;  %v3339_v57 = vcombine.low %v2019_v13, %v2023_v48  ;;  %vm1274_vm6 = vcmp.eq.s32.totalorder %v5970_v43, %v6615_v58  ;;  %v6626_v30 = vld [vmem:[#allocation6_spill] sm:$0xff] }
 0x3ca   : > { %v3340_v7 = vcombine.low %v2027_v9, %v2031_v53  ;;  %v3434_v22 = vrot.slane %v3420_v21, %v5462_v49  ;;  %v3341_v51 = vcombine.low %v2035_v61, %v2039_v31  ;;  %vm1275_vm7 = vcmp.eq.s32.totalorder %v5952_v6, %v6615_v58 }
 0x3cb   : > { %v3348_v20 = vrot.slane %v3338_v25, %v5462_v49  ;;  %v3355_v29 = vrot.slane %v3339_v57, %v5462_v49  ;;  %vm4712_vm8 = vmpackc.low %vm1275_vm7, %vm1274_vm6  ;;  %v2107_v17 = vrot.slane %v6625_v5, %v5427_v0  ;;  %v2111_v39 = vrot.slane %v6625_v5, %v5432_v2 }
 0x3cc   : > { %v3362_v19 = vrot.slane %v3340_v7, %v5462_v49  ;;  %v3435_v28 = vcombine.low %v3427_v45, %v3434_v22  ;;  %v3369_v27 = vrot.slane %v3341_v51, %v5462_v49  ;;  %4713 = vmatpush3.bf16.xpose.msk.msra.mxu1 %vm4712_vm8, %v6616_v10  ;;  %v2115_v44 = vrot.slane %v6625_v5, %v5435_v1 }
 0x3cd   : > { %v2119_v4 = vrot.slane %v6625_v5, %v5438_v18  ;;  %v3370_v38 = vcombine.low %v3348_v20, %v3355_v29  ;;  %v2123_v59 = vrot.slane %v6625_v5, %v5441_v24  ;;  %v2127_v41 = vrot.slane %v6625_v5, %v5444_v3  ;;  %v4731_v20 = vld [vmem:[%s6551_s1] sm:$0xf] }
 0x3ce   : > { %v2131_v35 = vrot.slane %v6625_v5, %v5447_v8  ;;  %4082 = vperm.xlu0 %4729, %v3435_v28   ;;  %v3371_v47 = vcombine.low %v3362_v19, %v3369_v27  ;;  %v2135_v10 = vrot.slane %v6625_v5, %v5455_v37  ;;  %v3485_v62 = vcombine.low %v2107_v17, %v2111_v39 }
 0x3cf   : > { %v3486_v56 = vcombine.low %v2115_v44, %v2119_v4  ;;  %v3378_v15 = vrot.slane %v3370_v38, %v5462_v49  ;;  %v3487_v26 = vcombine.low %v2123_v59, %v2127_v41  ;;  %v2075_v60 = vrot.slane %v6626_v30, %v5427_v0 }
 0x3d0   : > { %v2079_v23 = vrot.slane %v6626_v30, %v5432_v2  ;;  %v3385_v50 = vrot.slane %v3371_v47, %v5462_v49  ;;  %v3488_v36 = vcombine.low %v2131_v35, %v2135_v10  ;;  %v3495_v13 = vrot.slane %v3485_v62, %v5462_v49 }
 0x3d1   : > { %v3502_v46 = vrot.slane %v3486_v56, %v5462_v49  ;;  %v3509_v48 = vrot.slane %v3487_v26, %v5462_v49  ;;  %v2083_v9 = vrot.slane %v6626_v30, %v5435_v1  ;;  %v2087_v53 = vrot.slane %v6626_v30, %v5438_v18 }
 0x3d2   : > { %v2091_v21 = vrot.slane %v6626_v30, %v5441_v24  ;;  %v3386_v61 = vcombine.low %v3378_v15, %v3385_v50  ;;  %v3516_v31 = vrot.slane %v3488_v36, %v5462_v49  ;;  %v2095_v45 = vrot.slane %v6626_v30, %v5444_v3 }
 0x3d3   : > { %v3517_v25 = vcombine.low %v3495_v13, %v3502_v46  ;;  %v2099_v57 = vrot.slane %v6626_v30, %v5447_v8  ;;  %v2103_v7 = vrot.slane %v6626_v30, %v5455_v37  ;;  %v3436_v22 = vcombine.low %v2075_v60, %v2079_v23  ;;  %4631 = vmatmul.mubr.f32.vlgmr.msra.gmra.mrb[0].mxu1 %v4731_v20 }
 0x3d4   : > { %v3437_v51 = vcombine.low %v2083_v9, %v2087_v53  ;;  %4079 = vperm.xlu0 %4729, %v3386_v61   ;;  %v3518_v29 = vcombine.low %v3509_v48, %v3516_v31  ;;  %v3438_v5 = vcombine.low %v2091_v21, %v2095_v45  ;;  %v1723_v17 = vrot.slane %v5724_v11, %v5427_v0 }
 0x3d5   : > { %v3525_v19 = vrot.slane %v3517_v25, %v5462_v49  ;;  %v3439_v39 = vcombine.low %v2099_v57, %v2103_v7  ;;  %v3446_v28 = vrot.slane %v3436_v22, %v5462_v49  ;;  %v1727_v44 = vrot.slane %v5724_v11, %v5432_v2 }
 0x3d6   : > { %v3453_v27 = vrot.slane %v3437_v51, %v5462_v49  ;;  %v3532_v4 = vrot.slane %v3518_v29, %v5462_v49  ;;  %v3460_v38 = vrot.slane %v3438_v5, %v5462_v49  ;;  %v1731_v59 = vrot.slane %v5724_v11, %v5435_v1 }
 0x3d7   : > { %v1735_v41 = vrot.slane %v5724_v11, %v5438_v18  ;;  %v3467_v35 = vrot.slane %v3439_v39, %v5462_v49  ;;  %v1739_v10 = vrot.slane %v5724_v11, %v5441_v24  ;;  %v1743_v62 = vrot.slane %v5724_v11, %v5444_v3 }
 0x3d8   : > { %v3468_v47 = vcombine.low %v3446_v28, %v3453_v27  ;;  %v3533_v56 = vcombine.low %v3525_v19, %v3532_v4  ;;  %v1747_v15 = vrot.slane %v5724_v11, %v5447_v8  ;;  %v1751_v26 = vrot.slane %v5724_v11, %v5455_v37 }
 0x3d9   : > { %v2897_v30 = vcombine.low %v1723_v17, %v1727_v44  ;;  %v3469_v60 = vcombine.low %v3460_v38, %v3467_v35  ;;  %v2898_v50 = vcombine.low %v1731_v59, %v1735_v41  ;;  %v2899_v36 = vcombine.low %v1739_v10, %v1743_v62 }
 0x3da   : > { %v3476_v23 = vrot.slane %v3468_v47, %v5462_v49  ;;  %4088 = vperm.xlu0 %4729, %v3533_v56   ;;  %v2900_v13 = vcombine.low %v1747_v15, %v1751_v26  ;;  %v1755_v48 = vrot.slane %v5887_v33, %v5427_v0  ;;  %v1759_v9 = vrot.slane %v5887_v33, %v5432_v2 }
 0x3db   : > { %v2907_v46 = vrot.slane %v2897_v30, %v5462_v49  ;;  %v3483_v53 = vrot.slane %v3469_v60, %v5462_v49  ;;  %v2914_v11 = vrot.slane %v2898_v50, %v5462_v49  ;;  %v2921_v21 = vrot.slane %v2899_v36, %v5462_v49 }
 0x3dc   : > { %v1763_v61 = vrot.slane %v5887_v33, %v5435_v1  ;;  %v2928_v31 = vrot.slane %v2900_v13, %v5462_v49  ;;  %v1767_v25 = vrot.slane %v5887_v33, %v5438_v18  ;;  %v1771_v45 = vrot.slane %v5887_v33, %v5441_v24 }
 0x3dd   : > { %v1775_v57 = vrot.slane %v5887_v33, %v5444_v3  ;;  %v3484_v7 = vcombine.low %v3476_v23, %v3483_v53  ;;  %v2929_v22 = vcombine.low %v2907_v46, %v2914_v11  ;;  %v1779_v51 = vrot.slane %v5887_v33, %v5447_v8 }
 0x3de   : > { %v1783_v20 = vrot.slane %v5887_v33, %v5455_v37  ;;  %v2930_v29 = vcombine.low %v2921_v21, %v2928_v31  ;;  %v2946_v19 = vcombine.low %v1755_v48, %v1759_v9  ;;  %v2947_v5 = vcombine.low %v1763_v61, %v1767_v25 }
 0x3df   : > { %v2948_v17 = vcombine.low %v1771_v45, %v1775_v57  ;;  %4085 = vperm.xlu0 %4729, %v3484_v7   ;;  %v2937_v39 = vrot.slane %v2929_v22, %v5462_v49  ;;  %v1787_v27 = vrot.slane %v5872_v42, %v5427_v0  ;;  %v1791_v44 = vrot.slane %v5872_v42, %v5432_v2 }
 0x3e0   : > { %v2949_v28 = vcombine.low %v1779_v51, %v1783_v20  ;;  %v2944_v4 = vrot.slane %v2930_v29, %v5462_v49  ;;  %v2956_v38 = vrot.slane %v2946_v19, %v5462_v49  ;;  %v2963_v33 = vrot.slane %v2947_v5, %v5462_v49 }
 0x3e1   : > { %v2970_v59 = vrot.slane %v2948_v17, %v5462_v49  ;;  %v1795_v35 = vrot.slane %v5872_v42, %v5435_v1  ;;  %v1799_v47 = vrot.slane %v5872_v42, %v5438_v18  ;;  %v1803_v10 = vrot.slane %v5872_v42, %v5441_v24 }
 0x3e2   : > { %v2977_v41 = vrot.slane %v2949_v28, %v5462_v49  ;;  %v2945_v62 = vcombine.low %v2937_v39, %v2944_v4  ;;  %v2978_v56 = vcombine.low %v2956_v38, %v2963_v33  ;;  %v1807_v15 = vrot.slane %v5872_v42, %v5444_v3 }
 0x3e3   : > { %v1811_v26 = vrot.slane %v5872_v42, %v5447_v8  ;;  %v1815_v60 = vrot.slane %v5872_v42, %v5455_v37  ;;  %v2995_v23 = vcombine.low %v1787_v27, %v1791_v44  ;;  %v2996_v50 = vcombine.low %v1795_v35, %v1799_v47 }
 0x3e4   : > { %v2979_v30 = vcombine.low %v2970_v59, %v2977_v41  ;;  %4052 = vperm.xlu0 %4729, %v2945_v62   ;;  %v2986_v36 = vrot.slane %v2978_v56, %v5462_v49  ;;  %v2997_v13 = vcombine.low %v1803_v10, %v1807_v15  ;;  %v1819_v46 = vrot.slane %v5928_v54, %v5427_v0 }
 0x3e5   : > { %v1823_v48 = vrot.slane %v5928_v54, %v5432_v2  ;;  %v2998_v53 = vcombine.low %v1811_v26, %v1815_v60  ;;  %v3005_v11 = vrot.slane %v2995_v23, %v5462_v49  ;;  %v3012_v21 = vrot.slane %v2996_v50, %v5462_v49 }
 0x3e6   : > { %v2993_v9 = vrot.slane %v2979_v30, %v5462_v49  ;;  %v3019_v42 = vrot.slane %v2997_v13, %v5462_v49  ;;  %v1827_v61 = vrot.slane %v5928_v54, %v5435_v1  ;;  %v1831_v31 = vrot.slane %v5928_v54, %v5438_v18 }
 0x3e7   : > { %v1835_v25 = vrot.slane %v5928_v54, %v5441_v24  ;;  %v3026_v57 = vrot.slane %v2998_v53, %v5462_v49  ;;  %v3027_v7 = vcombine.low %v3005_v11, %v3012_v21  ;;  %v1839_v22 = vrot.slane %v5928_v54, %v5444_v3 }
 0x3e8   : > { %v2994_v45 = vcombine.low %v2986_v36, %v2993_v9  ;;  %v1843_v51 = vrot.slane %v5928_v54, %v5447_v8  ;;  %v1847_v20 = vrot.slane %v5928_v54, %v5455_v37  ;;  %v3044_v29 = vcombine.low %v1819_v46, %v1823_v48 }
 0x3e9   : > { %v3045_v19 = vcombine.low %v1827_v61, %v1831_v31  ;;  %v3028_v5 = vcombine.low %v3019_v42, %v3026_v57  ;;  %v3035_v17 = vrot.slane %v3027_v7, %v5462_v49  ;;  %v3046_v39 = vcombine.low %v1835_v25, %v1839_v22 }
 0x3ea   : > { %4055 = vperm.xlu0 %4729, %v2994_v45   ;;  %v1851_v28 = vrot.slane %v5903_v55, %v5427_v0  ;;  %v3047_v27 = vcombine.low %v1843_v51, %v1847_v20  ;;  %v3054_v44 = vrot.slane %v3044_v29, %v5462_v49  ;;  %v1855_v38 = vrot.slane %v5903_v55, %v5432_v2 }
 0x3eb   : > { %v3061_v4 = vrot.slane %v3045_v19, %v5462_v49  ;;  %v3042_v54 = vrot.slane %v3028_v5, %v5462_v49  ;;  %v3068_v33 = vrot.slane %v3046_v39, %v5462_v49  ;;  %v1859_v59 = vrot.slane %v5903_v55, %v5435_v1 }
 0x3ec   : > { %v1863_v41 = vrot.slane %v5903_v55, %v5438_v18  ;;  %v3075_v35 = vrot.slane %v3047_v27, %v5462_v49  ;;  %v1867_v10 = vrot.slane %v5903_v55, %v5441_v24  ;;  %v1871_v62 = vrot.slane %v5903_v55, %v5444_v3 }
 0x3ed   : > { %v3076_v47 = vcombine.low %v3054_v44, %v3061_v4  ;;  %v3043_v56 = vcombine.low %v3035_v17, %v3042_v54  ;;  %v1875_v15 = vrot.slane %v5903_v55, %v5447_v8  ;;  %v1879_v26 = vrot.slane %v5903_v55, %v5455_v37 }
 0x3ee   : > { %v3093_v30 = vcombine.low %v1851_v28, %v1855_v38  ;;  %v3077_v60 = vcombine.low %v3068_v33, %v3075_v35  ;;  %v3094_v50 = vcombine.low %v1859_v59, %v1863_v41  ;;  %v3095_v36 = vcombine.low %v1867_v10, %v1871_v62 }
 0x3ef   : > { %v3084_v23 = vrot.slane %v3076_v47, %v5462_v49  ;;  %4058 = vperm.xlu0 %4729, %v3043_v56   ;;  %v3096_v13 = vcombine.low %v1875_v15, %v1879_v26  ;;  %v1883_v48 = vrot.slane %v5970_v43, %v5427_v0  ;;  %v1887_v9 = vrot.slane %v5970_v43, %v5432_v2 }
 0x3f0   : > { %v3103_v46 = vrot.slane %v3093_v30, %v5462_v49  ;;  %v3091_v53 = vrot.slane %v3077_v60, %v5462_v49  ;;  %v3110_v55 = vrot.slane %v3094_v50, %v5462_v49  ;;  %v3117_v11 = vrot.slane %v3095_v36, %v5462_v49 }
 0x3f1   : > { %v1891_v21 = vrot.slane %v5970_v43, %v5435_v1  ;;  %v3124_v42 = vrot.slane %v3096_v13, %v5462_v49  ;;  %v1895_v61 = vrot.slane %v5970_v43, %v5438_v18  ;;  %v1899_v31 = vrot.slane %v5970_v43, %v5441_v24 }
 0x3f2   : > { %v1903_v25 = vrot.slane %v5970_v43, %v5444_v3  ;;  %v3092_v45 = vcombine.low %v3084_v23, %v3091_v53  ;;  %v3125_v57 = vcombine.low %v3103_v46, %v3110_v55  ;;  %v1907_v7 = vrot.slane %v5970_v43, %v5447_v8 }
 0x3f3   : > { %v1911_v22 = vrot.slane %v5970_v43, %v5455_v37  ;;  %v3126_v51 = vcombine.low %v3117_v11, %v3124_v42  ;;  %v3142_v20 = vcombine.low %v1883_v48, %v1887_v9  ;;  %v3143_v29 = vcombine.low %v1891_v21, %v1895_v61 }
 0x3f4   : > { %v3144_v19 = vcombine.low %v1899_v31, %v1903_v25  ;;  %4061 = vperm.xlu0 %4729, %v3092_v45   ;;  %v3133_v5 = vrot.slane %v3125_v57, %v5462_v49  ;;  %v1915_v39 = vrot.slane %v5952_v6, %v5427_v0  ;;  %v1919_v28 = vrot.slane %v5952_v6, %v5432_v2 }
 0x3f5   : > { %v3145_v17 = vcombine.low %v1907_v7, %v1911_v22  ;;  %v3140_v27 = vrot.slane %v3126_v51, %v5462_v49  ;;  %v3152_v44 = vrot.slane %v3142_v20, %v5462_v49  ;;  %v3159_v43 = vrot.slane %v3143_v29, %v5462_v49 }
 0x3f6   : > { %v3166_v4 = vrot.slane %v3144_v19, %v5462_v49  ;;  %v1923_v54 = vrot.slane %v5952_v6, %v5435_v1  ;;  %v1927_v33 = vrot.slane %v5952_v6, %v5438_v18  ;;  %v1931_v59 = vrot.slane %v5952_v6, %v5441_v24 }
 0x3f7   : > { %v3173_v38 = vrot.slane %v3145_v17, %v5462_v49  ;;  %v3141_v41 = vcombine.low %v3133_v5, %v3140_v27  ;;  %v3174_v35 = vcombine.low %v3152_v44, %v3159_v43  ;;  %v1935_v47 = vrot.slane %v5952_v6, %v5444_v3 }
 0x3f8   : > { %v1939_v10 = vrot.slane %v5952_v6, %v5447_v8  ;;  %v1943_v56 = vrot.slane %v5952_v6, %v5455_v37  ;;  %v3191_v15 = vcombine.low %v1915_v39, %v1919_v28  ;;  %v3192_v26 = vcombine.low %v1923_v54, %v1927_v33  ;;  %v4732_v33 = vld [vmem:[%s4793_s24] sm:$0xff] }
 0x3f9   : > { %v3175_v62 = vcombine.low %v3166_v4, %v3173_v38  ;;  %4064 = vperm.xlu0 %4729, %v3141_v41   ;;  %v3182_v30 = vrot.slane %v3174_v35, %v5462_v49  ;;  %v3193_v60 = vcombine.low %v1931_v59, %v1935_v47  ;;  %v2203_v42 = vrot.slane %v5856_v14, %v5427_v0 }
 0x3fa   : > { %v3194_v50 = vcombine.low %v1939_v10, %v1943_v56  ;;  %v3201_v36 = vrot.slane %v3191_v15, %v5462_v49  ;;  %v3208_v13 = vrot.slane %v3192_v26, %v5462_v49  ;;  %v2207_v61 = vrot.slane %v5856_v14, %v5432_v2  ;;  %v6627_v56 = vld [vmem:[#allocation2_spill] sm:$0xff] }
 0x3fb   : > { %v3189_v23 = vrot.slane %v3175_v62, %v5462_v49  ;;  %v3215_v46 = vrot.slane %v3193_v60, %v5462_v49  ;;  %v2211_v31 = vrot.slane %v5856_v14, %v5435_v1  ;;  %v2215_v25 = vrot.slane %v5856_v14, %v5438_v18 }
 0x3fc   : > { %v3222_v9 = vrot.slane %v3194_v50, %v5462_v49  ;;  %v3223_v53 = vcombine.low %v3201_v36, %v3208_v13  ;;  %v2219_v45 = vrot.slane %v5856_v14, %v5441_v24  ;;  %v2223_v57 = vrot.slane %v5856_v14, %v5444_v3 }
 0x3fd   : > { %v3190_v48 = vcombine.low %v3182_v30, %v3189_v23  ;;  %v2227_v7 = vrot.slane %v5856_v14, %v5447_v8  ;;  %v2231_v22 = vrot.slane %v5856_v14, %v5455_v37  ;;  %v3632_v51 = vcombine.low %v2203_v42, %v2207_v61 }
 0x3fe   : > { %v3224_v6 = vcombine.low %v3215_v46, %v3222_v9  ;;  %v3231_v55 = vrot.slane %v3223_v53, %v5462_v49  ;;  %v3633_v20 = vcombine.low %v2211_v31, %v2215_v25  ;;  %v3634_v29 = vcombine.low %v2219_v45, %v2223_v57 }
 0x3ff   : > { %4067 = vperm.xlu0 %4729, %v3190_v48   ;;  %v3635_v19 = vcombine.low %v2227_v7, %v2231_v22  ;;  %v2235_v5 = vrot.slane %v5700_v34, %v5427_v0  ;;  %v2239_v17 = vrot.slane %v5700_v34, %v5432_v2  ;;  %v3642_v39 = vrot.slane %v3632_v51, %v5462_v49 }
 0x400   : > { %v3238_v11 = vrot.slane %v3224_v6, %v5462_v49  ;;  %v2243_v28 = vrot.slane %v5700_v34, %v5435_v1  ;;  %v2247_v14 = vrot.slane %v5700_v34, %v5438_v18  ;;  %v2251_v27 = vrot.slane %v5700_v34, %v5441_v24 }
 0x401   : > { %v3649_v43 = vrot.slane %v3633_v20, %v5462_v49  ;;  %v3656_v4 = vrot.slane %v3634_v29, %v5462_v49  ;;  %v2255_v38 = vrot.slane %v5700_v34, %v5444_v3  ;;  %v2259_v54 = vrot.slane %v5700_v34, %v5447_v8 }
 0x402   : > { %v3239_v21 = vcombine.low %v3231_v55, %v3238_v11  ;;  %v3663_v35 = vrot.slane %v3635_v19, %v5462_v49  ;;  %v2263_v47 = vrot.slane %v5700_v34, %v5455_v37  ;;  %v2267_v10 = vrot.slane %v5877_v52, %v5427_v0 }
 0x403   : > { %v2271_v26 = vrot.slane %v5877_v52, %v5432_v2  ;;  %v2275_v30 = vrot.slane %v5877_v52, %v5435_v1  ;;  %v2279_v23 = vrot.slane %v5877_v52, %v5438_v18  ;;  %v2283_v50 = vrot.slane %v5877_v52, %v5441_v24 }
 0x404   : > { %4070 = vperm.xlu0 %4729, %v3239_v21   ;;  %v2287_v34 = vrot.slane %v5877_v52, %v5444_v3  ;;  %v3681_v13 = vcombine.low %v2235_v5, %v2239_v17  ;;  %v2291_v46 = vrot.slane %v5877_v52, %v5447_v8  ;;  %v2295_v48 = vrot.slane %v5877_v52, %v5455_v37 }
 0x405   : > { %v3664_v53 = vcombine.low %v3642_v39, %v3649_v43  ;;  %v3682_v6 = vcombine.low %v2243_v28, %v2247_v14  ;;  %v3683_v55 = vcombine.low %v2251_v27, %v2255_v38  ;;  %v3665_v21 = vcombine.low %v3656_v4, %v3663_v35 }
 0x406   : > { %v3684_v42 = vcombine.low %v2259_v54, %v2263_v47  ;;  %v3730_v61 = vcombine.low %v2267_v10, %v2271_v26  ;;  %v3731_v25 = vcombine.low %v2275_v30, %v2279_v23  ;;  %v3732_v45 = vcombine.low %v2283_v50, %v2287_v34 }
 0x407   : > { %v2299_v57 = vrot.slane %v5860_v40, %v5427_v0  ;;  %v3733_v7 = vcombine.low %v2291_v46, %v2295_v48  ;;  %v2303_v52 = vrot.slane %v5860_v40, %v5432_v2  ;;  %v2307_v22 = vrot.slane %v5860_v40, %v5435_v1 }
 0x408   : > { %v2311_v51 = vrot.slane %v5860_v40, %v5438_v18  ;;  %v2315_v20 = vrot.slane %v5860_v40, %v5441_v24  ;;  %v2319_v29 = vrot.slane %v5860_v40, %v5444_v3  ;;  %v2323_v19 = vrot.slane %v5860_v40, %v5447_v8 }
 0x409   : > { %v2327_v5 = vrot.slane %v5860_v40, %v5455_v37  ;;  %v3691_v17 = vrot.slane %v3681_v13, %v5462_v49  ;;  %v3698_v39 = vrot.slane %v3682_v6, %v5462_v49  ;;  %v3672_v28 = vrot.slane %v3664_v53, %v5462_v49 }
 0x40a   : > { %v3679_v14 = vrot.slane %v3665_v21, %v5462_v49  ;;  %v3705_v27 = vrot.slane %v3683_v55, %v5462_v49  ;;  %v3740_v43 = vrot.slane %v3730_v61, %v5462_v49  ;;  %v3747_v4 = vrot.slane %v3731_v25, %v5462_v49 }
 0x40b   : > { %v3754_v38 = vrot.slane %v3732_v45, %v5462_v49  ;;  %v3761_v40 = vrot.slane %v3733_v7, %v5462_v49  ;;  %v3779_v54 = vcombine.low %v2299_v57, %v2303_v52  ;;  %v2331_v35 = vrot.slane %v5906_v63, %v5427_v0 }
 0x40c   : > { %v2335_v47 = vrot.slane %v5906_v63, %v5432_v2  ;;  %v2339_v10 = vrot.slane %v5906_v63, %v5435_v1  ;;  %v2355_v26 = vrot.slane %v5906_v63, %v5447_v8  ;;  %v2359_v30 = vrot.slane %v5906_v63, %v5455_v37 }
 0x40d   : > { %v3680_v23 = vcombine.low %v3672_v28, %v3679_v14  ;;  %v3762_v34 = vcombine.low %v3740_v43, %v3747_v4  ;;  %v3789_v13 = vrot.slane %v3779_v54, %v5462_v49  ;;  %v2367_v21 = vrot.slane %v5884_v12, %v5432_v2 }
 0x40e   : > { %v3828_v53 = vcombine.low %v2331_v35, %v2335_v47  ;;  %v2375_v61 = vrot.slane %v5884_v12, %v5438_v18  ;;  %v2383_v25 = vrot.slane %v5884_v12, %v5444_v3  ;;  %v2387_v45 = vrot.slane %v5884_v12, %v5447_v8 }
 0x40f   : > { %v2391_v57 = vrot.slane %v5884_v12, %v5455_v37  ;;  %v2399_v43 = vrot.slane %v5955_v32, %v5432_v2  ;;  %v2403_v4 = vrot.slane %v5955_v32, %v5435_v1  ;;  %v2415_v54 = vrot.slane %v5955_v32, %v5444_v3 }
 0x410   : > { %v2423_v35 = vrot.slane %v5955_v32, %v5455_v37  ;;  %vm4136_vm9 = vcmask 195712   ;;  %vm4143_vm10 = vcmask 261312   ;;  %vm4150_vm11 = vcmask 326912  }
 0x411   : > { %vm4157_vm12 = vcmask 392512   ;;  %vm4164_vm13 = vcmask 458112   ;;  %vm4171_vm14 = vcmask 523712   ;;  %vm4178_vm15 = vcmask 589312  }
 0x412   : > { %vm4185_vm1 = vcmask 654912   ;;  %vm4192_vm2 = vcmask 720512   ;;  %vm4199_vm3 = vcmask 786112   ;;  %vm4206_vm4 = vcmask 851712  }
 0x413   : > { %vm4213_vm5 = vcmask 917312   ;;  %vm4220_vm6 = vcmask 982912   ;;  %vm4227_vm7 = vcmask 1048512  }
 0x4a6   : > { %v1422_v44 = vpop.f32.mrb[0].mxu1 }
 0x4a7   : > { %v4328_v59 = vsub.f32 %v1422_v44, %v4732_v33  ;;  %v1424_v41 = vpop.f32.mrb[1].mxu1  ;;  %v3780_v33 = vcombine.low %v2307_v22, %v2311_v51  ;;  %v3770_v22 = vrot.slane %v3762_v34, %v5462_v49 }
 0x4a8   : > { %v1429_v62 = vcombine.low %v1422_v44, %v1424_v41  ;;  %v4329_v15 = vsub.f32 %v1424_v41, %v6627_v56  ;;  %v3712_v44 = vrot.slane %v3684_v42, %v5462_v49  ;;  %v3782_v41 = vcombine.low %v2323_v19, %v2327_v5 }
 0x4a9   : > { %v4330_v60 = vmul.f32 %v4328_v59, %v4328_v59  ;;  %v3781_v59 = vcombine.low %v2315_v20, %v2319_v29  ;;  %v2347_v56 = vrot.slane %v5906_v63, %v5441_v24  ;;  %v3796_v46 = vrot.slane %v3780_v33, %v5462_v49 }
 0x4aa   : > { %1431 = vst [vmem:[%s238_s8] sm:$0xff] %v1429_v62  ;;  %v4331_v36 = vmul.f32 %v4329_v15, %v4329_v15  ;;  %v2343_v62 = vrot.slane %v5906_v63, %v5438_v18  ;;  %v2351_v15 = vrot.slane %v5906_v63, %v5444_v3  ;;  %v3714_v50 = vcombine.low %v3705_v27, %v3712_v44 }
 0x4ab   : > { %v4332_v9 = vsel %vm415_vm0, %v4330_v60, 0.0  ;;  %v3713_v60 = vcombine.low %v3691_v17, %v3698_v39  ;;  %v3803_v48 = vrot.slane %v3781_v59, %v5462_v49  ;;  %v2363_v63 = vrot.slane %v5884_v12, %v5427_v0 }
 0x4ac   : > { %v4333_v11 = vsel %vm415_vm0, %v4331_v36, 0.0  ;;  %v3763_v36 = vcombine.low %v3754_v38, %v3761_v40  ;;  %v3829_v6 = vcombine.low %v2339_v10, %v2343_v62  ;;  %v3830_v55 = vcombine.low %v2347_v56, %v2351_v15 }
 0x4ad   : > { %v4334_v31 = vadd.f32 %v4333_v11, %v4332_v9  ;;  %v3810_v9 = vrot.slane %v3782_v41, %v5462_v49  ;;  %v3831_v11 = vcombine.low %v2355_v26, %v2359_v30  ;;  %v2371_v42 = vrot.slane %v5884_v12, %v5435_v1 }
 0x4ae   : > { %v3721_v7 = vrot.slane %v3713_v60, %v5462_v49  ;;  %v3728_v52 = vrot.slane %v3714_v50, %v5462_v49  ;;  %v3777_v51 = vrot.slane %v3763_v36, %v5462_v49  ;;  %v3811_v20 = vcombine.low %v3789_v13, %v3796_v46 }
 0x4af   : > { %4335 = vadd.xlane.f32.xlu1 %v4334_v31  ;;  %v2379_v31 = vrot.slane %v5884_v12, %v5441_v24  ;;  %v3812_v29 = vcombine.low %v3803_v48, %v3810_v9  ;;  %v3838_v19 = vrot.slane %v3828_v53, %v5462_v49  ;;  %v3845_v5 = vrot.slane %v3829_v6, %v5462_v49 }
 0x4b0   : > { %v3852_v17 = vrot.slane %v3830_v55, %v5462_v49  ;;  %v3859_v39 = vrot.slane %v3831_v11, %v5462_v49  ;;  %v3877_v28 = vcombine.low %v2363_v63, %v2367_v21  ;;  %v3878_v12 = vcombine.low %v2371_v42, %v2375_v61 }
 0x4b1   : > { %v3879_v14 = vcombine.low %v2379_v31, %v2383_v25  ;;  %v3880_v27 = vcombine.low %v2387_v45, %v2391_v57  ;;  %v2395_v44 = vrot.slane %v5955_v32, %v5427_v0  ;;  %v2407_v38 = vrot.slane %v5955_v32, %v5438_v18 }
 0x4b2   : > { %v2411_v40 = vrot.slane %v5955_v32, %v5441_v24  ;;  %v3729_v33 = vcombine.low %v3721_v7, %v3728_v52  ;;  %v3778_v59 = vcombine.low %v3770_v22, %v3777_v51  ;;  %v2419_v41 = vrot.slane %v5955_v32, %v5447_v8 }
 0x4b3   : > { %v3819_v47 = vrot.slane %v3811_v20, %v5462_v49  ;;  %v3826_v10 = vrot.slane %v3812_v29, %v5462_v49  ;;  %v3860_v62 = vcombine.low %v3838_v19, %v3845_v5  ;;  %v3861_v56 = vcombine.low %v3852_v17, %v3859_v39 }
 0x4b4   : > { %v3887_v15 = vrot.slane %v3877_v28, %v5462_v49  ;;  %v3894_v26 = vrot.slane %v3878_v12, %v5462_v49  ;;  %v3901_v30 = vrot.slane %v3879_v14, %v5462_v49  ;;  %v3908_v60 = vrot.slane %v3880_v27, %v5462_v49  ;;  %v4026_v27 = vpop.permute.xlu0 %4025 }
 0x4b5   : > { %v3927_v50 = vcombine.low %v2403_v4, %v2407_v38  ;;  %v3928_v34 = vcombine.low %v2411_v40, %v2415_v54  ;;  %v2427_v32 = vrot.slane %v5925_v16, %v5427_v0  ;;  %v3929_v36 = vcombine.low %v2419_v41, %v2423_v35  ;;  %v4029_v35 = vpop.permute.xlu1 %4028 }
 0x4b6   : > { %v2431_v13 = vrot.slane %v5925_v16, %v5432_v2  ;;  %v2435_v46 = vrot.slane %v5925_v16, %v5435_v1  ;;  %v2439_v48 = vrot.slane %v5925_v16, %v5438_v18  ;;  %v2443_v9 = vrot.slane %v5925_v16, %v5441_v24 }
 0x4b7   : > { %v2447_v53 = vrot.slane %v5925_v16, %v5444_v3  ;;  %v2451_v6 = vrot.slane %v5925_v16, %v5447_v8  ;;  %v2455_v0 = vrot.slane %v5925_v16, %v5455_v37  ;;  %v3827_v55 = vcombine.low %v3819_v47, %v3826_v10 }
 0x4b8   : > { %v3868_v2 = vrot.slane %v3860_v62, %v5462_v49  ;;  %v3875_v1 = vrot.slane %v3861_v56, %v5462_v49  ;;  %v3909_v11 = vcombine.low %v3887_v15, %v3894_v26  ;;  %v3910_v18 = vcombine.low %v3901_v30, %v3908_v60 }
 0x4b9   : > { %v3943_v24 = vrot.slane %v3927_v50, %v5462_v49  ;;  %v3950_v3 = vrot.slane %v3928_v34, %v5462_v49  ;;  %v3957_v21 = vrot.slane %v3929_v36, %v5462_v49  ;;  %v3975_v8 = vcombine.low %v2427_v32, %v2431_v13  ;;  %v4032_v47 = vpop.permute.xlu1 %4031 }
 0x4ba   : > { %v3976_v42 = vcombine.low %v2435_v46, %v2439_v48  ;;  %v3977_v61 = vcombine.low %v2443_v9, %v2447_v53  ;;  %v3978_v37 = vcombine.low %v2451_v6, %v2455_v0  ;;  %v3876_v16 = vcombine.low %v3868_v2, %v3875_v1  ;;  %v6628_v9 = vld [vmem:[#allocation4_spill] sm:$0xff] }
 0x4bb   : > { %v3917_v31 = vrot.slane %v3909_v11, %v5462_v49  ;;  %v3924_v25 = vrot.slane %v3910_v18, %v5462_v49  ;;  %v3959_v57 = vcombine.low %v3950_v3, %v3957_v21  ;;  %v3985_v7 = vrot.slane %v3975_v8, %v5462_v49 }
 0x4bc   : > { %v3992_v52 = vrot.slane %v3976_v42, %v5462_v49  ;;  %v3999_v22 = vrot.slane %v3977_v61, %v5462_v49  ;;  %v4006_v51 = vrot.slane %v3978_v37, %v5462_v49  ;;  %v4124_v34 = vadd.s32 4294967288, %v6615_v58 }
 0x4bd   : > { %v3925_v20 = vcombine.low %v3917_v31, %v3924_v25  ;;  %v3973_v19 = vrot.slane %v3959_v57, %v5462_v49  ;;  %v4077_v62 = vpop.permute.xlu1 %4076  ;;  %v4131_v36 = vadd.s32 4294967280, %v6615_v58  ;;  %v4122_v6 = vsub.s32 %v6615_v58, %v6628_v9 }
 0x4be   : > { %v4007_v5 = vcombine.low %v3985_v7, %v3992_v52  ;;  %v4008_v17 = vcombine.low %v3999_v22, %v4006_v51  ;;  %v4127_v53 = vsub.s32 %v4124_v34, %v6628_v9  ;;  %v4138_v0 = vadd.s32 4294967272, %v6615_v58 }
 0x4bf   : > { %v4134_v2 = vsub.s32 %v4131_v36, %v6628_v9  ;;  %v4145_v1 = vadd.s32 4294967264, %v6615_v58  ;;  %v4152_v18 = vadd.s32 4294967256, %v6615_v58  ;;  %vm4129_vm0 = vcmask 130112  }
 0x4c0   : > { %4097 = vperm.xlu1 %4728, %v3680_v23   ;;  %v3926_v23 = vcombine.low %v2395_v44, %v2399_v43  ;;  %v4015_v28 = vrot.slane %v4007_v5, %v5462_v49  ;;  %v4022_v12 = vrot.slane %v4008_v17, %v5462_v49  ;;  %v6413_v44 = vpop.permute.xlu0 %4034  ;;  %v4128_v3 = vrot.slane %v4029_v35, %v4127_v53 }
 0x4c1   : > { %v6431_v15 = vpop.permute.xlu1 %4094  ;;  %v4166_v21 = vadd.s32 4294967240, %v6615_v58  ;;  %v4123_v61 = vrot.slane %v4026_v27, %v4122_v6  ;;  %v4141_v37 = vsub.s32 %v4138_v0, %v6628_v9  ;;  %v4135_v25 = vrot.slane %v4032_v47, %v4134_v2 }
 0x4c2   : > { %v3936_v63 = vrot.slane %v3926_v23, %v5462_v49  ;;  %v4023_v14 = vcombine.low %v4015_v28, %v4022_v12  ;;  %v4155_v7 = vsub.s32 %v4152_v18, %v6628_v9  ;;  %v4159_v52 = vadd.s32 4294967248, %v6615_v58 }
 0x4c3   : > { %v6465_v51 = vsub.s32 %v4166_v21, %v6628_v9  ;;  %v4130_v5 = vsel %vm4129_vm0, %v4128_v3, %v4123_v61  ;;  %v4180_v12 = vadd.s32 4294967224, %v6615_v58 }
 0x4c4   : > { %4100 = vperm.xlu1 %4728, %v3729_v33   ;;  %v3958_v45 = vcombine.low %v3936_v63, %v3943_v24  ;;  %v6415_v43 = vpop.permute.xlu0 %4040  ;;  %v4162_v35 = vsub.s32 %v4159_v52, %v6628_v9 }
 0x4c5   : > { %v6435_v30 = vpop.permute.xlu1 %4091  ;;  %v4183_v36 = vsub.s32 %v4180_v12, %v6628_v9  ;;  %v4266_v61 = vrot.slane %v6431_v15, %v6465_v51 }
 0x4c6   : > { %v3966_v29 = vrot.slane %v3958_v45, %v5462_v49  ;;  %v4148_v45 = vsub.s32 %v4145_v1, %v6628_v9 }
 0x4c8   : > { %4103 = vperm.xlu1 %4728, %v3778_v59   ;;  %v3974_v39 = vcombine.low %v3966_v29, %v3973_v19  ;;  %v6417_v4 = vpop.permute.xlu0 %4037 }
 0x4c9   : > { %v4149_v28 = vrot.slane %v6417_v4, %v4148_v45 }
 0x4cc   : > { %4106 = vperm.xlu1 %4728, %v3827_v55   ;;  %v6419_v38 = vpop.permute.xlu0 %4046 }
 0x4d0   : > { %4109 = vperm.xlu1 %4728, %v3876_v16   ;;  %v6421_v40 = vpop.permute.xlu0 %4043  ;;  %v4236_v16 = vrot.slane %v4077_v62, %v4127_v53 }
 0x4d4   : > { %4112 = vperm.xlu1 %4728, %v3925_v20   ;;  %v6423_v54 = vpop.permute.xlu0 %4049  ;;  %v4173_v20 = vadd.s32 4294967232, %v6615_v58 }
 0x4d6   : > { %v4176_v62 = vsub.s32 %v4173_v20, %v6628_v9 }
 0x4d8   : > { %4115 = vperm.xlu1 %4728, %v3974_v39   ;;  %v4074_v33 = vpop.permute.xlu0 %4073  ;;  %v4137_v39 = vsel %vm4136_vm9, %v4135_v25, %v4130_v5  ;;  %v4177_v3 = vrot.slane %v6423_v54, %v4176_v62 }
 0x4d9   : > { %v4232_v63 = vrot.slane %v4074_v33, %v4122_v6  ;;  %v4156_v6 = vrot.slane %v6415_v43, %v4155_v7 }
 0x4db   : > { %v4237_v22 = vsel %vm4129_vm0, %v4236_v16, %v4232_v63 }
 0x4dc   : > { %4118 = vperm.xlu1 %4728, %v4023_v14   ;;  %v6425_v59 = vpop.permute.xlu0 %4082  ;;  %v4187_v14 = vadd.s32 4294967216, %v6615_v58 }
 0x4dd   : > { %v4246_v17 = vrot.slane %v6425_v59, %v4141_v37  ;;  %v4194_v59 = vadd.s32 4294967208, %v6615_v58 }
 0x4e0   : > { %v4080_v41 = vpop.permute.xlu0 %4079 }
 0x4e1   : > { %v4241_v8 = vrot.slane %v4080_v41, %v4134_v2  ;;  %v4142_v41 = vrot.slane %v6413_v44, %v4141_v37  ;;  %v4208_v44 = vadd.s32 4294967192, %v6615_v58  ;;  %v4215_v2 = vadd.s32 4294967184, %v6615_v58 }
 0x4e3   : > { %v4242_v29 = vsel %vm4136_vm9, %v4241_v8, %v4237_v22  ;;  %v4218_v25 = vsub.s32 %v4215_v2, %v6628_v9 }
 0x4e4   : > { %v6427_v10 = vpop.permute.xlu0 %4088  ;;  %v4247_v47 = vsel %vm4143_vm10, %v4246_v17, %v4242_v29 }
 0x4e8   : > { %v6429_v56 = vpop.permute.xlu0 %4085 }
 0x4e9   : > { %v4251_v19 = vrot.slane %v6429_v56, %v4148_v45  ;;  %v4144_v56 = vsel %vm4143_vm10, %v4142_v41, %v4137_v39 }
 0x4ea   : > { %v4151_v34 = vsel %vm4150_vm11, %v4149_v28, %v4144_v56 }
 0x4eb   : > { %v4252_v4 = vsel %vm4150_vm11, %v4251_v19, %v4247_v47  ;;  %v4158_v18 = vsel %vm4157_vm12, %v4156_v6, %v4151_v34 }
 0x4ec   : > { %v6433_v26 = vpop.permute.xlu0 %4052 }
 0x4ed   : > { %v4184_v37 = vrot.slane %v6433_v26, %v4183_v36 }
 0x4f0   : > { %v6437_v60 = vpop.permute.xlu0 %4055 }
 0x4f4   : > { %v6441_v13 = vpop.permute.xlu0 %4058 }
 0x4f8   : > { %v6455_v42 = vpop.permute.xlu0 %4061 }
 0x4fc   : > { %v6476_v27 = vpop.permute.xlu0 %4064 }
 0x500   : > { %v4068_v1 = vpop.permute.xlu0 %4067 }
 0x501   : > { %v4219_v19 = vrot.slane %v4068_v1, %v4218_v25 }
 0x504   : > { %v4071_v52 = vpop.permute.xlu0 %4070 }
 0x53c   : > { %v4336_v23 = vpop.xlane.xlu1 %4335 }
 0x53d   : > { %v4337_v50 = vrot.slane %v4336_v23, 4 }
 0x53f   : > { %v4338_v32 = vadd.f32 %v4337_v50, %v4336_v23  ;;  %v4256_v23 = vrot.slane %v6427_v10, %v4155_v7  ;;  %v4201_v50 = vadd.s32 4294967200, %v6615_v58  ;;  %v4197_v10 = vsub.s32 %v4194_v59, %v6628_v9 }
 0x540   : > { %v6443_v46 = vpop.permute.xlu1 %4097 }
 0x541   : > { %v4339_v48 = vrot.slane %v4338_v32, 2  ;;  %v4257_v0 = vsel %vm4157_vm12, %v4256_v23, %v4252_v4  ;;  %v4204_v63 = vsub.s32 %v4201_v50, %v6628_v9  ;;  %v4198_v7 = vrot.slane %v6441_v13, %v4197_v10 }
 0x542   : > { %v6629_v50 = vlaneseq }
 0x543   : > { %v4340_v55 = vadd.f32 %v4339_v48, %v4338_v32  ;;  %v4163_v32 = vrot.slane %v6421_v40, %v4162_v35  ;;  %v4190_v48 = vsub.s32 %v4187_v14, %v6628_v9  ;;  %v4222_v40 = vadd.s32 4294967176, %v6615_v58 }
 0x544   : > { %v6451_v11 = vpop.permute.xlu1 %4100  ;;  %v4170_v58 = vrot.slane %v6419_v38, %v6465_v51  ;;  %vm4325_vm8 = vcmp.lt.s32.totalorder %v6629_v50, 256 }
 0x545   : > { %v4341_v24 = vrot.slane %v4340_v55, 1  ;;  %v4165_v43 = vsel %vm4164_vm13, %v4163_v32, %v4158_v18  ;;  %v4276_v16 = vrot.slane %v6451_v11, %v4183_v36  ;;  %v4225_v54 = vsub.s32 %v4222_v40, %v6628_v9 }
 0x546   : > { %v4205_v11 = vrot.slane %v6455_v42, %v4204_v63 }
 0x547   : > { %v4342_v31 = vadd.f32 %v4341_v24, %v4340_v55  ;;  %v4261_v55 = vrot.slane %v6435_v30, %v4162_v35  ;;  %v4211_v24 = vsub.s32 %v4208_v44, %v6628_v9  ;;  %v4271_v30 = vrot.slane %v6443_v46, %v4176_v62 }
 0x548   : > { %v6459_v57 = vpop.permute.xlu1 %4103  ;;  %v4172_v46 = vsel %vm4171_vm14, %v4170_v58, %v4165_v43  ;;  %v4226_v39 = vrot.slane %v4071_v52, %v4225_v54 }
 0x549   : > { %4714 = vpush %v4342_v31  ;;  %v4262_v21 = vsel %vm4164_vm13, %v4261_v55, %v4257_v0  ;;  %v4191_v31 = vrot.slane %v6437_v60, %v4190_v48  ;;  %v4281_v45 = vrot.slane %v6459_v57, %v4190_v48  ;;  %v4179_v26 = vsel %vm4178_vm15, %v4177_v3, %v4172_v46 }
 0x54a   : > { %v4267_v15 = vsel %vm4171_vm14, %v4266_v61, %v4262_v21  ;;  %v4186_v9 = vsel %vm4185_vm1, %v4184_v37, %v4179_v26  ;;  %v4212_v57 = vrot.slane %v6476_v27, %v4211_v24 }
 0x54b   : > { %v4272_v60 = vsel %vm4178_vm15, %v4271_v30, %v4267_v15  ;;  %v4193_v29 = vsel %vm4192_vm2, %v4191_v31, %v4186_v9 }
 0x54c   : > { %v6478_v33 = vpop.permute.xlu1 %4106  ;;  %v4277_v20 = vsel %vm4185_vm1, %v4276_v16, %v4272_v60  ;;  %v4200_v42 = vsel %vm4199_vm3, %v4198_v7, %v4193_v29 }
 0x54d   : > { %v4286_v38 = vrot.slane %v6478_v33, %v4197_v10  ;;  %v4282_v5 = vsel %vm4192_vm2, %v4281_v45, %v4277_v20  ;;  %v4207_v12 = vsel %vm4206_vm4, %v4205_v11, %v4200_v42 }
 0x54e   : > { %v4214_v33 = vsel %vm4213_vm5, %v4212_v57, %v4207_v12 }
 0x54f   : > { %v4287_v28 = vsel %vm4199_vm3, %v4286_v38, %v4282_v5  ;;  %v4221_v47 = vsel %vm4220_vm6, %v4219_v19, %v4214_v33 }
 0x550   : > { %v4110_v53 = vpop.permute.xlu1 %4109  ;;  %v4228_v62 = vsel %vm4227_vm7, %v4226_v39, %v4221_v47 }
 0x551   : > { %v4291_v22 = vrot.slane %v4110_v53, %v4204_v63 }
 0x553   : > { %v4292_v14 = vsel %vm4206_vm4, %v4291_v22, %v4287_v28 }
 0x554   : > { %v4113_v8 = vpop.permute.xlu1 %4112 }
 0x555   : > { %v4296_v13 = vrot.slane %v4113_v8, %v4211_v24 }
 0x557   : > { %v4297_v41 = vsel %vm4213_vm5, %v4296_v13, %v4292_v14 }
 0x558   : > { %v4116_v51 = vpop.permute.xlu1 %4115 }
 0x559   : > { %v4301_v17 = vrot.slane %v4116_v51, %v4218_v25 }
 0x55b   : > { %v4302_v59 = vsel %vm4220_vm6, %v4301_v17, %v4297_v41 }
 0x55c   : > { %v4119_v27 = vpop.permute.xlu1 %4118 }
 0x55d   : > { %v4306_v35 = vrot.slane %v4119_v27, %v4225_v54 }
 0x55f   : > { %v4307_v4 = vsel %vm4227_vm7, %v4306_v35, %v4302_v59 }
 0x560   : > { %v4308_v56 = vcombine.low %v4228_v62, %v4307_v4 }
 0x562   : > { %v4315_v23 = vrot.slane %v4308_v56, %v5462_v49 }
 0x564   : > { %v4322_v44 = vrot.slane %v4315_v23, %v5462_v49 }
 0x566   : > { %4327 = vst.msk [vmem:[%s243_s11] sm:$0x3] %vm4325_vm8, %v4322_v44 }
 0x57a   : > { %s4715_s15 = spop %4714 }
 0x57b   : > { %v4344_v34 = vstv %s4715_s15 }
 0x57c   : > { %4345 = vst [vmem:[%s247_s14] sm:$0x1] %v4344_v34 }
 0x57d PF: > { %s16_s18 = sadd.s32 1, %s4739_s18  }
 0x57e   : > { %p13_p5 = scmp.ge.s32.totalorder %s16_s18, 4  }
 0x580   :  { %15 = sbr.rel (!%p13_p5) target bundleno = 1 (0x1), region = 86 }

</bundles_post_ra>
